<compile_context>
chip_gen: v5e
topology: v5e:2x2
jax: 0.10.0
libtpu: 0.0.40
codegen_flags: <defaults>
</compile_context>

<pallas_src>
import functools

import jax
import jax.numpy as jnp
from jax import lax
from jax.experimental import pallas as pl
from jax.experimental.pallas import tpu as pltpu


def _contrastive_loss_kernel(x_aug_ref, y_aug_ref, y_tgt_aug_ref, out_ref,
                             pos_ref, acc_ref, *, margin, inv_n):
    k = pl.program_id(1)

    @pl.when(k == 0)
    def _init():
        # positive_i = clamp(||x_i - y_{t_i}||^2, 0): same augmented contraction,
        # evaluated once per B tile against the gathered target rows.
        pos = jnp.sum(x_aug_ref[...] * y_tgt_aug_ref[...], axis=1, keepdims=True)
        pos_ref[...] = jnp.maximum(pos, 0.0)                    # (tb, 1)
        acc_ref[...] = jnp.zeros_like(acc_ref)                  # (tb, 128)

    # Pairwise squared-distance tile on the MXU: x_aug @ y_aug.T over the
    # augmented contraction dim (D + 2) gives dist directly.
    dist = lax.dot_general(
        x_aug_ref[...], y_aug_ref[...],
        dimension_numbers=(((1,), (1,)), ((), ())),             # contract last dims
        preferred_element_type=jnp.float32,
        precision=lax.Precision.HIGHEST)                        # (tb, tn)
    scores = jnp.maximum(dist, 0.0)                             # clamp(., 0, inf)

    # Hinge against the per-row positive distance, then per-row partial sum.
    hinge = jnp.maximum((margin + pos_ref[...]) - scores, 0.0)  # (tb, tn)
    # Broadcast the (tb, 1) partial sum across the 128 lanes of the accumulator
    # so the final write is a dense slab store (no masked 1-lane vst).
    acc_ref[...] += jnp.sum(hinge, axis=1, keepdims=True)

    @pl.when(k == pl.num_programs(1) - 1)
    def _finalize():
        out_ref[...] = acc_ref[...] * inv_n


def contrastive_loss(logit, candidates, target, margin=0.0,
                     *, block_b=None, block_n=None):
    """logit: (B, D), candidates: (N, D), target: (B, 1) int -> loss (B,) f32."""
    B, D = logit.shape
    N, Dy = candidates.shape
    assert D == Dy, "logit / candidates feature dims must match"

    # Keep the epilogue math in f32 (matches the torch module).  If inputs
    # arrive as bf16 upstream they could be fed straight to the MXU instead.
    x = logit.astype(jnp.float32)
    y = candidates.astype(jnp.float32)
    tgt = target.reshape(B).astype(jnp.int32)

    # Fold norm terms into the contraction:  x_aug @ y_aug.T = squared distances.
    x_norm = jnp.sum(x * x, axis=1, keepdims=True)              # (B, 1)
    y_norm = jnp.sum(y * y, axis=1, keepdims=True)              # (N, 1)
    x_aug = jnp.concatenate([-2.0 * x, x_norm, jnp.ones((B, 1), jnp.float32)], axis=1)
    y_aug = jnp.concatenate([y, jnp.ones((N, 1), jnp.float32), y_norm], axis=1)
    # Gather the B target candidate rows once (O(B*D)); the kernel derives the
    # "positive" term from these instead of a one-hot pass over (B, N).
    y_tgt_aug = jnp.take(y_aug, tgt, axis=0)                    # (B, D+2)
    Da = D + 2

    # Tile sizes: B -> 'parallel' axis (megacore on v7x), N -> trailing
    # 'arbitrary' accumulation axis.  tb must be == B or a multiple of 128 so
    # the (tb, 128) output block stays (8,128)-legal and lane-dense.
    tb = block_b if block_b is not None else min(B, 128)
    tn = block_n if block_n is not None else min(N, 512)
    assert B % tb == 0 and N % tn == 0, "B/N must be divisible by the tile sizes"
    grid = (B // tb, N // tn)

    out = pl.pallas_call(
        functools.partial(_contrastive_loss_kernel,
                          margin=float(margin), inv_n=1.0 / float(N)),
        out_shape=jax.ShapeDtypeStruct((B, 128), jnp.float32),
        grid_spec=pltpu.PrefetchScalarGridSpec(
            num_scalar_prefetch=0,
            grid=grid,
            in_specs=[
                pl.BlockSpec((tb, Da), lambda i, k: (i, 0)),   # x_aug tile
                pl.BlockSpec((tn, Da), lambda i, k: (k, 0)),   # y_aug tile (streamed, double-buffered)
                pl.BlockSpec((tb, Da), lambda i, k: (i, 0)),   # gathered target rows
            ],
            out_specs=pl.BlockSpec((tb, 128), lambda i, k: (i, 0)),
            scratch_shapes=[
                pltpu.VMEM((tb, 1), jnp.float32),              # positive distances
                pltpu.VMEM((tb, 128), jnp.float32),            # lane-dense loss accumulator
            ],
        ),
        compiler_params=pltpu.CompilerParams(
            dimension_semantics=("parallel", "arbitrary")),
    )(x_aug, y_aug, y_tgt_aug)

    return out[:, 0]


def _reference(logit, candidates, target, margin=0.0):
    x = logit.astype(jnp.float32)
    y = candidates.astype(jnp.float32)
    x_norm = jnp.sum(x * x, axis=1, keepdims=True)
    y_norm = jnp.sum(y * y, axis=1, keepdims=True).T
    dist = x_norm + y_norm - 2.0 * jnp.dot(x, y.T, precision=lax.Precision.HIGHEST)
    scores = jnp.maximum(dist, 0.0)
    positive = jnp.take_along_axis(scores, target, axis=1)
    loss = jnp.maximum(margin + positive - scores, 0.0)
    return jnp.mean(loss, axis=1)


if __name__ == "__main__":
    key = jax.random.PRNGKey(0)
    k1, k2, k3 = jax.random.split(key, 3)

    B, N, D = 8, 1024, 128      # small, but exercises the N-accumulation grid (1, 2)
    margin = 0.25

    logit = jax.random.normal(k1, (B, D), dtype=jnp.float32)
    candidates = jax.random.normal(k2, (N, D), dtype=jnp.float32)
    target = jax.random.randint(k3, (B, 1), 0, N, dtype=jnp.int32)

    loss = contrastive_loss(logit, candidates, target, margin=margin)
    jax.block_until_ready(loss)

    ref = _reference(logit, candidates, target, margin=margin)
    assert loss.shape == (B,)
    assert jnp.allclose(loss, ref, atol=1e-4, rtol=1e-4), (loss, ref)

    print("KERNEL_OK")
</pallas_src>

<mosaic_0001>
module attributes {stable_mosaic.version = 11 : i64} {
  func.func @_contrastive_loss_kernel(%arg0: i32, %arg1: i32, %arg2: memref<8x130xf32, #tpu.memory_space<vmem>>, %arg3: memref<512x130xf32, #tpu.memory_space<vmem>>, %arg4: memref<8x130xf32, #tpu.memory_space<vmem>>, %arg5: memref<8x128xf32, #tpu.memory_space<vmem>>, %arg6: memref<8x1xf32, #tpu.memory_space<vmem>>, %arg7: memref<8x128xf32, #tpu.memory_space<vmem>>) attributes {dimension_semantics = [#tpu.dimension_semantics<parallel>, #tpu.dimension_semantics<arbitrary>], iteration_bounds = array<i64: 1, 2>, scalar_prefetch = 0 : i64, scratch_operands = 2 : i64, tpu.core_type = #tpu.core_type<tc>, window_params = [{transform_indices = @transform_0, window_bounds = array<i64: 8, 130>}, {transform_indices = @transform_1, window_bounds = array<i64: 512, 130>}, {transform_indices = @transform_2, window_bounds = array<i64: 8, 130>}, {transform_indices = @transform_3, window_bounds = array<i64: 8, 128>}]} {
    %c0_i32 = arith.constant 0 : i32
    %0 = arith.cmpi eq, %arg1, %c0_i32 : i32
    %1 = arith.extui %0 : i1 to i32
    %c0_i32_0 = arith.constant 0 : i32
    %2 = arith.cmpi ne, %1, %c0_i32_0 : i32
    scf.if %2 {
      %c0_15 = arith.constant 0 : index
      %c0_16 = arith.constant 0 : index
      %24 = vector.load %arg2[%c0_15, %c0_16] : memref<8x130xf32, #tpu.memory_space<vmem>>, vector<8x130xf32>
      %c0_17 = arith.constant 0 : index
      %c0_18 = arith.constant 0 : index
      %25 = vector.load %arg4[%c0_17, %c0_18] : memref<8x130xf32, #tpu.memory_space<vmem>>, vector<8x130xf32>
      %26 = arith.mulf %24, %25 : vector<8x130xf32>
      %cst_19 = arith.constant dense<0.000000e+00> : vector<8xf32>
      %27 = vector.multi_reduction <add>, %26, %cst_19 [1] : vector<8x130xf32> to vector<8xf32>
      %28 = vector.shape_cast %27 : vector<8xf32> to vector<8x1xf32>
      %cst_20 = arith.constant 0.000000e+00 : f32
      %29 = vector.broadcast %cst_20 : f32 to vector<8x1xf32>
      %30 = arith.maximumf %28, %29 : vector<8x1xf32>
      %c0_21 = arith.constant 0 : index
      %c0_22 = arith.constant 0 : index
      %31 = vector.load %arg6[%c0_21, %c0_22] : memref<8x1xf32, #tpu.memory_space<vmem>>, vector<8x1xf32>
      tpu.vector_store %arg6[%c0_21, %c0_22], %30 {strides = array<i32>} : memref<8x1xf32, #tpu.memory_space<vmem>>, vector<8x1xf32>,
      %cst_23 = arith.constant 0.000000e+00 : f32
      %32 = vector.broadcast %cst_23 : f32 to vector<8x128xf32>
      %c0_24 = arith.constant 0 : index
      %c0_25 = arith.constant 0 : index
      %33 = vector.load %arg7[%c0_24, %c0_25] : memref<8x128xf32, #tpu.memory_space<vmem>>, vector<8x128xf32>
      tpu.vector_store %arg7[%c0_24, %c0_25], %32 {strides = array<i32>} : memref<8x128xf32, #tpu.memory_space<vmem>>, vector<8x128xf32>,
    } else {
    }
    %c0 = arith.constant 0 : index
    %c0_1 = arith.constant 0 : index
    %3 = vector.load %arg2[%c0, %c0_1] : memref<8x130xf32, #tpu.memory_space<vmem>>, vector<8x130xf32>
    %c0_2 = arith.constant 0 : index
    %c0_3 = arith.constant 0 : index
    %4 = vector.load %arg3[%c0_2, %c0_3] : memref<512x130xf32, #tpu.memory_space<vmem>>, vector<512x130xf32>
    %cst = arith.constant dense<0.000000e+00> : vector<8x512xf32>
    %5 = tpu.matmul %3, %4, %cst {dimension_numbers = #tpu.dot_dimension_numbers<[1], [1], [0], [0], [0, 0, 1, 0], [], []>, precision = #tpu.contract_precision<fp32>} : vector<8x130xf32>, vector<512x130xf32>, vector<8x512xf32> -> vector<8x512xf32>
    %cst_4 = arith.constant 0.000000e+00 : f32
    %6 = vector.broadcast %cst_4 : f32 to vector<8x512xf32>
    %7 = arith.maximumf %5, %6 : vector<8x512xf32>
    %c0_5 = arith.constant 0 : index
    %c0_6 = arith.constant 0 : index
    %8 = vector.load %arg6[%c0_5, %c0_6] : memref<8x1xf32, #tpu.memory_space<vmem>>, vector<8x1xf32>
    %cst_7 = arith.constant 2.500000e-01 : f32
    %9 = vector.broadcast %cst_7 : f32 to vector<8x1xf32>
    %10 = arith.addf %9, %8 : vector<8x1xf32>
    %11 = vector.broadcast %10 : vector<8x1xf32> to vector<8x512xf32>
    %12 = arith.subf %11, %7 : vector<8x512xf32>
    %cst_8 = arith.constant 0.000000e+00 : f32
    %13 = vector.broadcast %cst_8 : f32 to vector<8x512xf32>
    %14 = arith.maximumf %12, %13 : vector<8x512xf32>
    %c0_9 = arith.constant 0 : index
    %c0_10 = arith.constant 0 : index
    %15 = vector.load %arg7[%c0_9, %c0_10] : memref<8x128xf32, #tpu.memory_space<vmem>>, vector<8x128xf32>
    %cst_11 = arith.constant dense<0.000000e+00> : vector<8xf32>
    %16 = vector.multi_reduction <add>, %14, %cst_11 [1] : vector<8x512xf32> to vector<8xf32>
    %17 = vector.shape_cast %16 : vector<8xf32> to vector<8x1xf32>
    %18 = vector.broadcast %17 : vector<8x1xf32> to vector<8x128xf32>
    %19 = arith.addf %15, %18 : vector<8x128xf32>
    %c0_12 = arith.constant 0 : index
    %c0_13 = arith.constant 0 : index
    %20 = vector.load %arg7[%c0_12, %c0_13] : memref<8x128xf32, #tpu.memory_space<vmem>>, vector<8x128xf32>
    tpu.vector_store %arg7[%c0_12, %c0_13], %19 {strides = array<i32>} : memref<8x128xf32, #tpu.memory_space<vmem>>, vector<8x128xf32>,
    %c1_i32 = arith.constant 1 : i32
    %21 = arith.cmpi eq, %arg1, %c1_i32 : i32
    %22 = arith.extui %21 : i1 to i32
    %c0_i32_14 = arith.constant 0 : i32
    %23 = arith.cmpi ne, %22, %c0_i32_14 : i32
    scf.if %23 {
      %c0_15 = arith.constant 0 : index
      %c0_16 = arith.constant 0 : index
      %24 = vector.load %arg7[%c0_15, %c0_16] : memref<8x128xf32, #tpu.memory_space<vmem>>, vector<8x128xf32>
      %cst_17 = arith.constant 9.765625E-4 : f32
      %25 = vector.broadcast %cst_17 : f32 to vector<8x128xf32>
      %26 = arith.mulf %24, %25 : vector<8x128xf32>
      %c0_18 = arith.constant 0 : index
      %c0_19 = arith.constant 0 : index
      %27 = vector.load %arg5[%c0_18, %c0_19] : memref<8x128xf32, #tpu.memory_space<vmem>>, vector<8x128xf32>
      tpu.vector_store %arg5[%c0_18, %c0_19], %26 {strides = array<i32>} : memref<8x128xf32, #tpu.memory_space<vmem>>, vector<8x128xf32>,
    } else {
    }
    return
  }
  func.func @transform_0(%arg0: i32, %arg1: i32) -> (i32, i32) {
    %c0_i32 = arith.constant 0 : i32
    %c0_i32_0 = arith.constant 0 : i32
    return %arg0, %c0_i32 : i32, i32
  }
  func.func @transform_1(%arg0: i32, %arg1: i32) -> (i32, i32) {
    %c0_i32 = arith.constant 0 : i32
    %c0_i32_0 = arith.constant 0 : i32
    return %arg1, %c0_i32 : i32, i32
  }
  func.func @transform_2(%arg0: i32, %arg1: i32) -> (i32, i32) {
    %c0_i32 = arith.constant 0 : i32
    %c0_i32_0 = arith.constant 0 : i32
    return %arg0, %c0_i32 : i32, i32
  }
  func.func @transform_3(%arg0: i32, %arg1: i32) -> (i32, i32) {
    %c0_i32 = arith.constant 0 : i32
    %c0_i32_0 = arith.constant 0 : i32
    return %arg0, %c0_i32 : i32, i32
  }
}

</mosaic_0001>

<bundles_post_ra>
// kernel: tpu_custom_call.1
= control target key start
LH: loop header
LB: loop body
LE: loop exit
PB: predicated region body
PF: predicated region fallthrough
CT: control target
= control target key end

     0   :  { %8 = vsyncpa [#allocation5], 0  ;;  %s3546_s12 = smov 0   ;;  %s3548_s13 = smov 0   ;;  %s5801_s0 = inlined_call_operand.vmem [shape: f32[8,130], index: 0, kind: input, shape index: {}]   ;;  %s5802_s1 = inlined_call_operand.vmem [shape: f32[1024,130], index: 1, kind: input, shape index: {}]   ;;  %s5803_s2 = inlined_call_operand.vmem [shape: f32[8,130], index: 2, kind: input, shape index: {}]   ;;  %s5804_s3 = inlined_call_operand.hbm [shape: f32[8,128], index: 3, kind: output, shape index: {}]  }
   0x1   :  { %s3550_s14 = smov 0  }
   0x2 LB: > { %s3417_s15 = sadd.s32 4294967295, %s3521_s14   ;;  %s23_s16 = sadd.s32 1, %s3517_s13  ;;  %s3521_s14 = sphi %s3550_s14, %s14_s14   ;;  %s3517_s13 = sphi %s3548_s13, %s6000_s13   ;;  %s3513_s12 = sphi %s3546_s12, %s5999_s12  }
   0x3   : > { %p24_p0 = scmp.ge.s32.totalorder %s23_s16, 2  ;;  %p3422_p1 = scmp.ge.s32.totalorder %s3521_s14, 1 }
   0x4   : > { %p172_p2 = scmp.lt.s32.totalorder %s3521_s14, 3 }
   0x5   : > { %s6002_s16 = smov (%p24_p0, %s23_s16), 0 }
   0x6   : > { %p173_p3 = pnand %p3422_p1, %p172_p2 }
   0x8   : > { %176 = sbr.rel (%p173_p3) target bundleno = 1199 (0x4af), region = 32 }
   0xd   : > { %s3423_s17 = sshll.u32 %s3513_s12, 6  ;;  %p3426_p5 = scmp.ne.s32.totalorder %s3513_s12, 0 }
   0xe   : > { %p208_p4 = scmp.lt.s32.totalorder %s3423_s17, 127 }
   0xf   : > { %222 = sbr.rel (%p3426_p5) target bundleno = 146 (0x92), region = 36 }
  0x10   : > { %s6004_s17 = smov (!%p208_p4, %s3423_s17), 127 }
  0x11   : > { %s3432_s18 = sshll.u32 %s6004_s17, 4 }
  0x12   : > { %s3571_s21 = scalar_lea.vmem %s5802_s1, %s3432_s18 }
  0x14   : > { %v223_v0 = vld [vmem:[%s5801_s0] sm:$0xff]  ;;  %v224_v1 = vld [vmem:[%s5801_s0 + $0x8] sm:$0xff]  ;;  %vm229_vm0 = vcmask 15360   ;;  %v3523_v8 = vmov 0.0   ;;  %vm235_vm1 = vcmask 7168  }
  0x15   : > { %v225_v2 = vld [vmem:[%s5803_s2] sm:$0xff]  ;;  %v226_v3 = vld [vmem:[%s5803_s2 + $0x8] sm:$0xff]  ;;  %237 = vst [vmem:[#allocation3] sm:$0xff] %v3523_v8 }
  0x16   : > { %v227_v4 = vmul.f32 %v225_v2, %v223_v0  ;;  %v228_v5 = vmul.f32 %v226_v3, %v224_v1 }
  0x18   : > { %v230_v6 = vsel %vm229_vm0, %v228_v5, 0.0 }
  0x19   : > { %v231_v7 = vadd.f32 %v230_v6, %v227_v4 }
  0x1b   : > { %232 = vadd.xlane.f32.xlu0 %v231_v7 }
  0x8e   : > { %v233_v9 = vpop.xlane.xlu0 %232 }
  0x8f   : > { %v234_v10 = vmax.f32 %v233_v9, 0.0 }
  0x91   : > { %236 = vst.msk [vmem:[#allocation2] sm:$0xff] %vm235_vm1, %v234_v10 }
  0x92 PF: > { %v270_v11 = vld [vmem:[%s3571_s21 + $0xf0] sm:$0xff]  ;;  %v268_v12 = vld [vmem:[%s3571_s21 + $0xe0] sm:$0xff]  ;;  %vm368_vm2 = vcmask 15360   ;;  %p3427_p6 = scmp.ne.s32.totalorder %s3513_s12, 1 }
  0x93   : > { %v266_v13 = vld [vmem:[%s3571_s21 + $0xd0] sm:$0xff]  ;;  %v3589_v14 = vand.u32 4294901760, %v270_v11  ;;  %v3591_v15 = vand.u32 4294901760, %v268_v12  ;;  %v264_v17 = vld [vmem:[%s3571_s21 + $0xc0] sm:$0xff] }
  0x94   : > { %v3593_v16 = vand.u32 4294901760, %v266_v13  ;;  %v3604_v20 = vand.u32 4294901760, %v264_v17  ;;  %v262_v22 = vld [vmem:[%s3571_s21 + $0xb0] sm:$0xff]  ;;  %v260_v30 = vld [vmem:[%s3571_s21 + $0xa0] sm:$0xff] }
  0x95   : > { %565 = vmatpush.xpose.msra.mxu0 %v3589_v14  ;;  %v3598_v18 = vsub.f32 %v270_v11, %v3589_v14  ;;  %761 = vmatpush.xpose.msra.mxu3 %v3589_v14  ;;  %v3602_v19 = vsub.f32 %v268_v12, %v3591_v15  ;;  %v3613_v25 = vand.u32 4294901760, %v262_v22  ;;  %v3629_v32 = vand.u32 4294901760, %v260_v30  ;;  %v258_v37 = vld [vmem:[%s3571_s21 + $0x90] sm:$0xff]  ;;  %v256_v43 = vld [vmem:[%s3571_s21 + $0x80] sm:$0xff] }
  0x96   : > { %v3607_v21 = vsub.f32 %v266_v13, %v3593_v16  ;;  %v3625_v29 = vsub.f32 %v264_v17, %v3604_v20  ;;  %v3642_v38 = vand.u32 4294901760, %v258_v37  ;;  %v3662_v47 = vand.u32 4294901760, %v256_v43  ;;  %v254_v49 = vld [vmem:[%s3571_s21 + $0x70] sm:$0xff]  ;;  %v252_v55 = vld [vmem:[%s3571_s21 + $0x60] sm:$0xff] }
  0x97   : > { %708 = vmatpush.xpose.msra.mxu2 %v3598_v18  ;;  %v607_v23 = vand.u32 4294901760, %v3598_v18  ;;  %v613_v24 = vand.u32 4294901760, %v3602_v19  ;;  %v3637_v36 = vsub.f32 %v262_v22, %v3613_v25  ;;  %v3650_v42 = vsub.f32 %v260_v30, %v3629_v32  ;;  %v250_v61 = vld [vmem:[%s3571_s21 + $0x50] sm:$0xff]  ;;  %v248_v3 = vld [vmem:[%s3571_s21 + $0x40] sm:$0xff]  ;;  %v271_v22 = vld [vmem:[%s3571_s21 + $0xf8] sm:$0xff] }
  0x98   : > { %v619_v28 = vand.u32 4294901760, %v3607_v21  ;;  %v625_v35 = vand.u32 4294901760, %v3625_v29  ;;  %v3656_v44 = vsub.f32 %v258_v37, %v3642_v38  ;;  %v3673_v53 = vand.u32 4294901760, %v254_v49  ;;  %v246_v9 = vld [vmem:[%s3571_s21 + $0x30] sm:$0xff] }
  0x99   : > { %567 = vmatpush.xpose.msra.mxu0 %v3591_v15  ;;  %v608_v26 = vsub.f32 %v3598_v18, %v607_v23  ;;  %763 = vmatpush.xpose.msra.mxu3 %v3591_v15  ;;  %v614_v27 = vsub.f32 %v3602_v19, %v613_v24  ;;  %v631_v41 = vand.u32 4294901760, %v3637_v36  ;;  %v637_v48 = vand.u32 4294901760, %v3650_v42 }
  0x9a   : > { %v620_v34 = vsub.f32 %v3607_v21, %v619_v28  ;;  %v626_v40 = vsub.f32 %v3625_v29, %v625_v35  ;;  %v643_v50 = vand.u32 4294901760, %v3656_v44  ;;  %v3676_v54 = vsub.f32 %v256_v43, %v3662_v47 }
  0x9b   : > { %v609_v31 = vand.u32 4294901760, %v608_v26  ;;  %711 = vmatpush.xpose.msra.mxu2 %v3602_v19  ;;  %v615_v33 = vand.u32 4294901760, %v614_v27  ;;  %v632_v46 = vsub.f32 %v3637_v36, %v631_v41  ;;  %v638_v52 = vsub.f32 %v3650_v42, %v637_v48  ;;  %v244_v26 = vld [vmem:[%s3571_s21 + $0x20] sm:$0xff]  ;;  %v255_v19 = vld [vmem:[%s3571_s21 + $0x78] sm:$0xff] }
  0x9c   : > { %v621_v39 = vand.u32 4294901760, %v620_v34  ;;  %v627_v45 = vand.u32 4294901760, %v626_v40  ;;  %v644_v56 = vsub.f32 %v3656_v44, %v643_v50  ;;  %v3685_v58 = vand.u32 4294901760, %v252_v55  ;;  %v242_v40 = vld [vmem:[%s3571_s21 + $0x10] sm:$0xff] }
  0x9d   : > { %569 = vmatpush.xpose.msra.mxu0 %v3593_v16  ;;  %610 = vmatpush.xpose.msra.mxu1 %v609_v31  ;;  %v633_v51 = vand.u32 4294901760, %v632_v46  ;;  %v639_v57 = vand.u32 4294901760, %v638_v52  ;;  %v649_v59 = vand.u32 4294901760, %v3676_v54  ;;  %v3689_v60 = vsub.f32 %v254_v49, %v3673_v53  ;;  %v267_v49 = vld [vmem:[%s3571_s21 + $0xd8] sm:$0xff] }
  0x9e   : > { %765 = vmatpush.xpose.msra.mxu3 %v3593_v16  ;;  %v3694_v62 = vand.u32 4294901760, %v250_v61  ;;  %v645_v63 = vand.u32 4294901760, %v644_v56  ;;  %v3702_v2 = vsub.f32 %v252_v55, %v3685_v58  ;;  %v3707_v4 = vand.u32 4294901760, %v248_v3 }
  0x9f   : > { %714 = vmatpush.xpose.msra.mxu2 %v3607_v21  ;;  %v650_v0 = vsub.f32 %v3676_v54, %v649_v59  ;;  %v5815_v1 = vand.u32 4294901760, %v3689_v60  ;;  %v3728_v17 = vand.u32 4294901760, %v246_v9  ;;  %v418_v30 = vsel %vm368_vm2, %v271_v22, 0  ;;  %v253_v21 = vld [vmem:[%s3571_s21 + $0x68] sm:$0xff] }
  0xa0   : > { %v3710_v5 = vsub.f32 %v250_v61, %v3694_v62  ;;  %v5811_v8 = vand.u32 4294901760, %v3702_v2  ;;  %v3722_v11 = vsub.f32 %v248_v3, %v3707_v4  ;;  %v3740_v34 = vand.u32 4294901760, %v244_v26 }
  0xa1   : > { %571 = vmatpush.xpose.msra.mxu0 %v3604_v20  ;;  %616 = vmatpush.xpose.msra.mxu1 %v615_v33  ;;  %v651_v6 = vand.u32 4294901760, %v650_v0  ;;  %v656_v7 = vsub.f32 %v3689_v60, %v5815_v1  ;;  %v3743_v37 = vsub.f32 %v246_v9, %v3728_v17  ;;  %v3749_v43 = vand.u32 4294901760, %v418_v30 }
  0xa2   : > { %767 = vmatpush.xpose.msra.mxu3 %v3604_v20  ;;  %v5810_v10 = vand.u32 4294901760, %v3710_v5  ;;  %v662_v13 = vsub.f32 %v3702_v2, %v5811_v8  ;;  %v5808_v27 = vand.u32 4294901760, %v3722_v11  ;;  %v3757_v52 = vand.u32 4294901760, %v242_v40  ;;  %v259_v8 = vld [vmem:[%s3571_s21 + $0x98] sm:$0xff] }
  0xa3   : > { %717 = vmatpush.xpose.msra.mxu2 %v3625_v29  ;;  %v657_v12 = vand.u32 4294901760, %v656_v7  ;;  %v5806_v55 = vand.u32 4294901760, %v3743_v37  ;;  %v3761_v56 = vsub.f32 %v244_v26, %v3740_v34  ;;  %v3767_v61 = vsub.f32 %v418_v30, %v3749_v43  ;;  %v251_v29 = vld [vmem:[%s3571_s21 + $0x58] sm:$0xff] }
  0xa4   : > { %v663_v31 = vand.u32 4294901760, %v662_v13  ;;  %v668_v33 = vsub.f32 %v3710_v5, %v5810_v10  ;;  %v412_v0 = vsel %vm368_vm2, %v267_v49, 0  ;;  %v3781_v13 = vsub.f32 %v242_v40, %v3757_v52  ;;  %v263_v49 = vld [vmem:[%s3571_s21 + $0xb8] sm:$0xff] }
  0xa5   : > { %573 = vmatpush.xpose.msra.mxu0 %v3613_v25  ;;  %622 = vmatpush.xpose.msra.mxu1 %v621_v39  ;;  %v269_v39 = vld [vmem:[%s3571_s21 + $0xe8] sm:$0xff]  ;;  %v680_v7 = vsub.f32 %v3743_v37, %v5806_v55  ;;  %v3784_v22 = vand.u32 4294901760, %v412_v0  ;;  %v5807_v26 = vand.u32 4294901760, %v3767_v61  ;;  %v400_v18 = vsel %vm368_vm2, %v259_v8, 0 }
  0xa6   : > { %769 = vmatpush.xpose.msra.mxu3 %v3613_v25  ;;  %v415_v46 = vsel %vm368_vm2, %v269_v39, 0  ;;  %v5809_v40 = vand.u32 4294901760, %v3781_v13  ;;  %v261_v55 = vld [vmem:[%s3571_s21 + $0xa8] sm:$0xff]  ;;  %v3861_v1 = vand.u32 4294901760, %v400_v18 }
  0xa7   : > { %720 = vmatpush.xpose.msra.mxu2 %v3637_v36  ;;  %v388_v36 = vsel %vm368_vm2, %v251_v29, 0 }
  0xa9   : > { %575 = vmatpush.xpose.msra.mxu0 %v3629_v32  ;;  %628 = vmatpush.xpose.msra.mxu1 %v627_v45  ;;  %v674_v45 = vsub.f32 %v3722_v11, %v5808_v27 }
  0xaa   : > { %771 = vmatpush.xpose.msra.mxu3 %v3629_v32 }
  0xab   : > { %723 = vmatpush.xpose.msra.mxu2 %v3650_v42  ;;  %v675_v3 = vand.u32 4294901760, %v674_v45  ;;  %v247_v42 = vld [vmem:[%s3571_s21 + $0x38] sm:$0xff] }
  0xad   : > { %577 = vmatpush.xpose.msra.mxu0 %v3642_v38  ;;  %634 = vmatpush.xpose.msra.mxu1 %v633_v51  ;;  %v669_v51 = vand.u32 4294901760, %v668_v33  ;;  %v681_v33 = vand.u32 4294901760, %v680_v7  ;;  %v406_v7 = vsel %vm368_vm2, %v263_v49, 0 }
  0xae   : > { %773 = vmatpush.xpose.msra.mxu3 %v3642_v38 }
  0xaf   : > { %726 = vmatpush.xpose.msra.mxu2 %v3656_v44 }
  0xb1   : > { %579 = vmatpush.xpose.msra.mxu0 %v3662_v47  ;;  %640 = vmatpush.xpose.msra.mxu1 %v639_v57  ;;  %v240_v57 = vld [vmem:[%s3571_s21] sm:$0xff] }
  0xb2   : > { %775 = vmatpush.xpose.msra.mxu3 %v3662_v47  ;;  %v3777_v9 = vand.u32 4294901760, %v240_v57 }
  0xb3   : > { %729 = vmatpush.xpose.msra.mxu2 %v3676_v54  ;;  %v243_v54 = vld [vmem:[%s3571_s21 + $0x18] sm:$0xff] }
  0xb4   : > { %v3798_v45 = vsub.f32 %v240_v57, %v3777_v9 }
  0xb5   : > { %581 = vmatpush.xpose.msra.mxu0 %v3673_v53  ;;  %646 = vmatpush.xpose.msra.mxu1 %v645_v63  ;;  %v3769_v63 = vand.u32 4294901760, %v415_v46 }
  0xb6   : > { %777 = vmatpush.xpose.msra.mxu3 %v3673_v53 }
  0xb7   : > { %732 = vmatpush.xpose.msra.mxu2 %v3689_v60  ;;  %v3789_v30 = vsub.f32 %v415_v46, %v3769_v63  ;;  %v3803_v46 = vsub.f32 %v412_v0, %v3784_v22  ;;  %v692_v0 = vsub.f32 %v3781_v13, %v5809_v40  ;;  %v403_v40 = vsel %vm368_vm2, %v261_v55, 0 }
  0xb9   : > { %583 = vmatpush.xpose.msra.mxu0 %v3685_v58  ;;  %652 = vmatpush.xpose.msra.mxu1 %v651_v6  ;;  %v265_v6 = vld [vmem:[%s3571_s21 + $0xc8] sm:$0xff]  ;;  %v693_v10 = vand.u32 4294901760, %v692_v0 }
  0xba   : > { %779 = vmatpush.xpose.msra.mxu3 %v3685_v58 }
  0xbb   : > { %735 = vmatpush.xpose.msra.mxu2 %v3702_v2 }
  0xbd   : > { %585 = vmatpush.xpose.msra.mxu0 %v3694_v62  ;;  %658 = vmatpush.xpose.msra.mxu1 %v657_v12  ;;  %v5805_v12 = vand.u32 4294901760, %v3761_v56 }
  0xbe   : > { %781 = vmatpush.xpose.msra.mxu3 %v3694_v62 }
  0xbf   : > { %738 = vmatpush.xpose.msra.mxu2 %v3710_v5  ;;  %v686_v39 = vsub.f32 %v3761_v56, %v5805_v12  ;;  %v5813_v12 = vand.u32 4294901760, %v3798_v45 }
  0xc1   : > { %587 = vmatpush.xpose.msra.mxu0 %v3707_v4  ;;  %664 = vmatpush.xpose.msra.mxu1 %v663_v31  ;;  %v409_v31 = vsel %vm368_vm2, %v265_v6, 0  ;;  %v5812_v6 = vand.u32 4294901760, %v3789_v30  ;;  %v687_v57 = vand.u32 4294901760, %v686_v39  ;;  %v3828_v39 = vand.u32 4294901760, %v406_v7 }
  0xc2   : > { %783 = vmatpush.xpose.msra.mxu3 %v3707_v4 }
  0xc3   : > { %741 = vmatpush.xpose.msra.mxu2 %v3722_v11  ;;  %v3845_v0 = vsub.f32 %v406_v7, %v3828_v39 }
  0xc5   : > { %589 = vmatpush.xpose.msra.mxu0 %v3728_v17  ;;  %670 = vmatpush.xpose.msra.mxu1 %v669_v51  ;;  %v3805_v51 = vand.u32 4294901760, %v409_v31  ;;  %v972_v7 = vand.u32 4294901760, %v3845_v0 }
  0xc6   : > { %785 = vmatpush.xpose.msra.mxu3 %v3728_v17 }
  0xc7   : > { %744 = vmatpush.xpose.msra.mxu2 %v3743_v37  ;;  %v3822_v27 = vsub.f32 %v409_v31, %v3805_v51  ;;  %v698_v31 = vsub.f32 %v3798_v45, %v5813_v12 }
  0xc9   : > { %591 = vmatpush.xpose.msra.mxu0 %v3740_v34  ;;  %676 = vmatpush.xpose.msra.mxu1 %v675_v3  ;;  %v949_v3 = vsub.f32 %v3767_v61, %v5807_v26  ;;  %v5814_v26 = vand.u32 4294901760, %v3803_v46  ;;  %v966_v55 = vand.u32 4294901760, %v3822_v27  ;;  %v699_v12 = vand.u32 4294901760, %v698_v31 }
  0xca   : > { %787 = vmatpush.xpose.msra.mxu3 %v3740_v34 }
  0xcb   : > { %747 = vmatpush.xpose.msra.mxu2 %v3761_v56  ;;  %v950_v49 = vand.u32 4294901760, %v949_v3  ;;  %v961_v3 = vsub.f32 %v3803_v46, %v5814_v26 }
  0xcd   : > { %593 = vmatpush.xpose.msra.mxu0 %v3757_v52  ;;  %682 = vmatpush.xpose.msra.mxu1 %v681_v33  ;;  %v955_v33 = vsub.f32 %v3789_v30, %v5812_v6  ;;  %v3847_v6 = vand.u32 4294901760, %v403_v40  ;;  %v962_v26 = vand.u32 4294901760, %v961_v3  ;;  %v3876_v3 = vsub.f32 %v400_v18, %v3861_v1 }
  0xce   : > { %789 = vmatpush.xpose.msra.mxu3 %v3757_v52 }
  0xcf   : > { %750 = vmatpush.xpose.msra.mxu2 %v3781_v13  ;;  %v984_v18 = vand.u32 4294901760, %v3876_v3 }
  0xd1   : > { %595 = vmatpush.xpose.msra.mxu0 %v3777_v9  ;;  %688 = vmatpush.xpose.msra.mxu1 %v687_v57  ;;  %v956_v57 = vand.u32 4294901760, %v955_v33  ;;  %v3859_v33 = vsub.f32 %v403_v40, %v3847_v6  ;;  %v973_v40 = vsub.f32 %v3845_v0, %v972_v7 }
  0xd2   : > { %791 = vmatpush.xpose.msra.mxu3 %v3777_v9 }
  0xd3   : > { %753 = vmatpush.xpose.msra.mxu2 %v3798_v45  ;;  %v978_v31 = vand.u32 4294901760, %v3859_v33 }
  0xd5   : > { %802 = vmatpush.xpose.msrb.mxu0 %v607_v23  ;;  %v257_v23 = vld [vmem:[%s3571_s21 + $0x88] sm:$0xff]  ;;  %694 = vmatpush.xpose.msra.mxu1 %v693_v10 }
  0xd6   : > { %951 = vmatpush.xpose.msrb.mxu3 %v950_v49  ;;  %v967_v49 = vsub.f32 %v3822_v27, %v966_v55  ;;  %v397_v8 = vsel %vm368_vm2, %v257_v23, 0  ;;  %v391_v23 = vsel %vm368_vm2, %v253_v21, 0 }
  0xd7   : > { %906 = vmatpush.xpose.msrb.mxu2 %v3749_v43  ;;  %v3869_v10 = vand.u32 4294901760, %v397_v8 }
  0xd9   : > { %806 = vmatpush.xpose.msrb.mxu0 %v613_v24  ;;  %700 = vmatpush.xpose.msra.mxu1 %v699_v12  ;;  %v968_v24 = vand.u32 4294901760, %v967_v49  ;;  %v394_v12 = vsel %vm368_vm2, %v255_v19, 0  ;;  %v3903_v49 = vand.u32 4294901760, %v391_v23  ;;  %v985_v19 = vsub.f32 %v3876_v3, %v984_v18 }
  0xda   : > { %957 = vmatpush.xpose.msrb.mxu3 %v956_v57  ;;  %v979_v57 = vsub.f32 %v3859_v33, %v978_v31 }
  0xdb   : > { %908 = vmatpush.xpose.msrb.mxu2 %v3769_v63  ;;  %v3924_v21 = vsub.f32 %v391_v23, %v3903_v49 }
  0xdd   : > { %810 = vmatpush.xpose.msrb.mxu0 %v619_v28  ;;  %869 = vmatpush.xpose.msrb.mxu1 %v3589_v14  ;;  %v3885_v14 = vsub.f32 %v397_v8, %v3869_v10  ;;  %v3887_v28 = vand.u32 4294901760, %v394_v12  ;;  %v980_v8 = vand.u32 4294901760, %v979_v57  ;;  %v3926_v57 = vand.u32 4294901760, %v388_v36 }
  0xde   : > { %963 = vmatpush.xpose.msrb.mxu3 %v962_v26  ;;  %v974_v26 = vand.u32 4294901760, %v973_v40 }
  0xdf   : > { %910 = vmatpush.xpose.msrb.mxu2 %v3784_v22 }
  0xe1   : > { %814 = vmatpush.xpose.msrb.mxu0 %v625_v35  ;;  %871 = vmatpush.xpose.msrb.mxu1 %v3591_v15  ;;  %v5816_v15 = vand.u32 4294901760, %v3885_v14  ;;  %v3901_v35 = vsub.f32 %v394_v12, %v3887_v28 }
  0xe2   : > { %969 = vmatpush.xpose.msrb.mxu3 %v968_v24 }
  0xe3   : > { %912 = vmatpush.xpose.msrb.mxu2 %v3805_v51  ;;  %v991_v40 = vsub.f32 %v3885_v14, %v5816_v15  ;;  %v5817_v12 = vand.u32 4294901760, %v3901_v35  ;;  %v382_v15 = vsel %vm368_vm2, %v247_v42, 0 }
  0xe5   : > { %818 = vmatpush.xpose.msrb.mxu0 %v631_v41  ;;  %873 = vmatpush.xpose.msrb.mxu1 %v3593_v16  ;;  %v238_v16 = vld [vmem:[%s5801_s0] sm:$0xff]  ;;  %v249_v41 = vld [vmem:[%s3571_s21 + $0x48] sm:$0xff]  ;;  %v992_v23 = vand.u32 4294901760, %v991_v40 }
  0xe6   : > { %975 = vmatpush.xpose.msrb.mxu3 %v974_v26  ;;  %v3914_v24 = vand.u32 4294901760, %v238_v16  ;;  %v986_v26 = vand.u32 4294901760, %v985_v19  ;;  %v5818_v19 = vand.u32 4294901760, %v3924_v21 }
  0xe7   : > { %914 = vmatpush.xpose.msrb.mxu2 %v3828_v39 }
  0xe8   : > { %v3929_v29 = vsub.f32 %v238_v16, %v3914_v24  ;;  %702 = vmatmul.f32.vlgmr.msra.gmra.mxu1 %v3914_v24  ;;  %v3947_v16 = vsub.f32 %v388_v36, %v3926_v57  ;;  %v3962_v36 = vand.u32 4294901760, %v382_v15 }
  0xe9   : > { %822 = vmatpush.xpose.msrb.mxu0 %v637_v48  ;;  %875 = vmatpush.xpose.msrb.mxu1 %v3604_v20  ;;  %v385_v20 = vsel %vm368_vm2, %v249_v41, 0 }
  0xea   : > { %981 = vmatpush.xpose.msrb.mxu3 %v980_v8  ;;  %5899 = vst [vmem:[#allocation7_spill] sm:$0xff] %v3929_v29  ;;  %v3936_v48 = vand.u32 4294901760, %v3929_v29  ;;  %756 = vmatmul.f32.vlgmr.msra.gmra.mxu2 %v3929_v29  ;;  %v997_v8 = vsub.f32 %v3901_v35, %v5817_v12  ;;  %v3949_v41 = vand.u32 4294901760, %v385_v20  ;;  %v5819_v42 = vand.u32 4294901760, %v3947_v16 }
  0xeb   : > { %916 = vmatpush.xpose.msrb.mxu2 %v3847_v6 }
  0xec   : > { %5900 = vst [vmem:[#allocation8_spill] sm:$0xff] %v3936_v48  ;;  %v599_v44 = vsub.f32 %v3929_v29, %v3936_v48  ;;  %795 = vmatmul.f32.vlgmr.msra.gmra.mxu3 %v3936_v48  ;;  %v998_v40 = vand.u32 4294901760, %v997_v8  ;;  %v3969_v12 = vsub.f32 %v385_v20, %v3949_v41  ;;  %v1009_v20 = vsub.f32 %v3947_v16, %v5819_v42 }
  0xed   : > { %826 = vmatpush.xpose.msrb.mxu0 %v643_v50  ;;  %877 = vmatpush.xpose.msrb.mxu1 %v3613_v25  ;;  %v245_v25 = vld [vmem:[%s3571_s21 + $0x28] sm:$0xff] }
  0xee   : > { %987 = vmatpush.xpose.msrb.mxu3 %v986_v26  ;;  %v3957_v50 = vand.u32 4294901760, %v599_v44  ;;  %v1003_v26 = vsub.f32 %v3924_v21, %v5818_v19  ;;  %v1014_v44 = vand.u32 4294901760, %v3969_v12 }
  0xef   : > { %918 = vmatpush.xpose.msrb.mxu2 %v3861_v1 }
  0xf0   : > { %5901 = vst [vmem:[#allocation9_spill] sm:$0xff] %v3957_v50  ;;  %601 = vmatmul.f32.vlgmr.msra.gmra.mxu0 %v3957_v50  ;;  %v1004_v8 = vand.u32 4294901760, %v1003_v26  ;;  %v1015_v26 = vsub.f32 %v3969_v12, %v1014_v44 }
  0xf1   : > { %830 = vmatpush.xpose.msrb.mxu0 %v649_v59  ;;  %879 = vmatpush.xpose.msrb.mxu1 %v3629_v32  ;;  %v379_v32 = vsel %vm368_vm2, %v245_v25, 0  ;;  %v5902_v59 = vand.u32 4294901760, %v3689_v60  ;;  %v376_v60 = vsel %vm368_vm2, %v243_v54, 0  ;;  %v241_v25 = vld [vmem:[%s3571_s21 + $0x8] sm:$0xff]  ;;  %v5904_v54 = vand.u32 4294901760, %v3710_v5 }
  0xf2   : > { %993 = vmatpush.xpose.msrb.mxu3 %v992_v23  ;;  %v3979_v23 = vsub.f32 %v382_v15, %v3962_v36  ;;  %v3985_v19 = vand.u32 4294901760, %v379_v32  ;;  %v4000_v42 = vand.u32 4294901760, %v376_v60 }
  0xf3   : > { %920 = vmatpush.xpose.msrb.mxu2 %v3869_v10 }
  0xf4   : > { %v5820_v15 = vand.u32 4294901760, %v3979_v23 }
  0xf5   : > { %834 = vmatpush.xpose.msrb.mxu0 %v5902_v59  ;;  %881 = vmatpush.xpose.msrb.mxu1 %v3642_v38  ;;  %v5903_v38 = vand.u32 4294901760, %v3702_v2  ;;  %v3998_v59 = vsub.f32 %v379_v32, %v3985_v19  ;;  %v373_v2 = vsel %vm368_vm2, %v241_v25, 0 }
  0xf6   : > { %999 = vmatpush.xpose.msrb.mxu3 %v998_v40  ;;  %v1010_v40 = vand.u32 4294901760, %v1009_v20  ;;  %v1021_v32 = vsub.f32 %v3979_v23, %v5820_v15  ;;  %v4017_v25 = vand.u32 4294901760, %v373_v2 }
  0xf7   : > { %922 = vmatpush.xpose.msrb.mxu2 %v3887_v28  ;;  %v1026_v20 = vand.u32 4294901760, %v3998_v59 }
  0xf9   : > { %838 = vmatpush.xpose.msrb.mxu0 %v5903_v38  ;;  %883 = vmatpush.xpose.msrb.mxu1 %v3662_v47  ;;  %v239_v47 = vld [vmem:[%s5801_s0 + $0x8] sm:$0xff]  ;;  %v4015_v38 = vsub.f32 %v376_v60, %v4000_v42 }
  0xfa   : > { %1005 = vmatpush.xpose.msrb.mxu3 %v1004_v8  ;;  %v1016_v8 = vand.u32 4294901760, %v1015_v26  ;;  %v370_v5 = vsel %vm368_vm2, %v239_v47, 0  ;;  %v4029_v26 = vsub.f32 %v373_v2, %v4017_v25 }
  0xfb   : > { %924 = vmatpush.xpose.msrb.mxu2 %v3903_v49  ;;  %v1032_v60 = vand.u32 4294901760, %v4015_v38  ;;  %v4031_v15 = vand.u32 4294901760, %v370_v5 }
  0xfd   : > { %842 = vmatpush.xpose.msrb.mxu0 %v5904_v54  ;;  %885 = vmatpush.xpose.msrb.mxu1 %v3673_v53  ;;  %v5905_v54 = vand.u32 4294901760, %v3722_v11  ;;  %v1022_v53 = vand.u32 4294901760, %v1021_v32  ;;  %v5906_v11 = vand.u32 4294901760, %v3743_v37  ;;  %v1033_v47 = vsub.f32 %v4015_v38, %v1032_v60 }
  0xfe   : > { %1011 = vmatpush.xpose.msrb.mxu3 %v1010_v40  ;;  %v1027_v40 = vsub.f32 %v3998_v59, %v1026_v20  ;;  %v1038_v32 = vand.u32 4294901760, %v4029_v26  ;;  %v4042_v2 = vsub.f32 %v370_v5, %v4031_v15  ;;  %v5909_v5 = vand.u32 4294901760, %v3781_v13 }
  0xff   : > { %926 = vmatpush.xpose.msrb.mxu2 %v3926_v57  ;;  %v5918_v13 = vand.u32 4294901760, %v3979_v23 }
 0x100   : > { %v1039_v37 = vsub.f32 %v4029_v26, %v1038_v32 }
 0x101   : > { %846 = vmatpush.xpose.msrb.mxu0 %v5905_v54  ;;  %887 = vmatpush.xpose.msrb.mxu1 %v3685_v58  ;;  %v1028_v58 = vand.u32 4294901760, %v1027_v40  ;;  %v4052_v54 = vand.u32 4294901760, %v4042_v2 }
 0x102   : > { %1017 = vmatpush.xpose.msrb.mxu3 %v1016_v8  ;;  %v5907_v8 = vand.u32 4294901760, %v3761_v56  ;;  %v1040_v56 = vand.u32 4294901760, %v1039_v37 }
 0x103   : > { %928 = vmatpush.xpose.msrb.mxu2 %v3949_v41  ;;  %5908 = vst [vmem:[#allocation10_spill] sm:$0xff] %v4052_v54 }
 0x105   : > { %850 = vmatpush.xpose.msrb.mxu0 %v5906_v11  ;;  %889 = vmatpush.xpose.msrb.mxu1 %v3694_v62  ;;  %v1034_v62 = vand.u32 4294901760, %v1033_v47 }
 0x106   : > { %1023 = vmatpush.xpose.msrb.mxu3 %v1022_v53  ;;  %v5910_v53 = vand.u32 4294901760, %v3798_v45 }
 0x107   : > { %930 = vmatpush.xpose.msrb.mxu2 %v3962_v36 }
 0x109   : > { %854 = vmatpush.xpose.msrb.mxu0 %v5907_v8  ;;  %891 = vmatpush.xpose.msrb.mxu1 %v3707_v4  ;;  %v940_v4 = vsub.f32 %v4042_v2, %v4052_v54  ;;  %v286_v8 = vld [vmem:[%s3571_s21 + $0x170] sm:$0xff] }
 0x10a   : > { %1029 = vmatpush.xpose.msrb.mxu3 %v1028_v58 }
 0x10b   : > { %932 = vmatpush.xpose.msrb.mxu2 %v3985_v19  ;;  %v4065_v40 = vand.u32 4294901760, %v940_v4 }
 0x10d   : > { %858 = vmatpush.xpose.msrb.mxu0 %v5909_v5  ;;  %893 = vmatpush.xpose.msrb.mxu1 %v3728_v17  ;;  %v5911_v17 = vand.u32 4294901760, %v3767_v61  ;;  %v4243_v5 = vand.u32 4294901760, %v286_v8 }
 0x10e   : > { %1035 = vmatpush.xpose.msrb.mxu3 %v1034_v62 }
 0x10f   : > { %934 = vmatpush.xpose.msrb.mxu2 %v4000_v42 }
 0x111   : > { %862 = vmatpush.xpose.msrb.mxu0 %v5910_v53  ;;  %895 = vmatpush.xpose.msrb.mxu1 %v3740_v34  ;;  %v5912_v34 = vand.u32 4294901760, %v3789_v30  ;;  %v284_v53 = vld [vmem:[%s3571_s21 + $0x160] sm:$0xff] }
 0x112   : > { %1041 = vmatpush.xpose.msrb.mxu3 %v1040_v56 }
 0x113   : > { %936 = vmatpush.xpose.msrb.mxu2 %v4017_v25 }
 0x114   : > { %864 = vmatmul.f32.vlgmr.msrb.gmra.mxu0 %v3914_v24 }
 0x115   : > { %1049 = vmatpush.xpose.msra.mxu0 %v3767_v61  ;;  %897 = vmatpush.xpose.msrb.mxu1 %v3757_v52  ;;  %v5913_v52 = vand.u32 4294901760, %v3803_v46  ;;  %v5916_v61 = vand.u32 4294901760, %v3924_v21 }
 0x116   : > { %1210 = vmatpush.xpose.msra.mxu3 %v3749_v43  ;;  %942 = vmatmul.f32.vlgmr.msrb.gmra.mxu2 %v4065_v40 }
 0x117   : > { %1143 = vmatpush.xpose.msra.mxu2 %v5911_v17  ;;  %1043 = vmatmul.f32.vlgmr.msrb.gmra.mxu3 %v4031_v15  ;;  %v4252_v17 = vand.u32 4294901760, %v284_v53 }
 0x119   : > { %1052 = vmatpush.xpose.msra.mxu0 %v3789_v30  ;;  %899 = vmatpush.xpose.msrb.mxu1 %v3777_v9 }
 0x11a   : > { %1212 = vmatpush.xpose.msra.mxu3 %v3769_v63 }
 0x11b   : > { %1147 = vmatpush.xpose.msra.mxu2 %v5912_v34 }
 0x11c   : > { %901 = vmatmul.f32.vlgmr.msrb.gmra.mxu1 %v3914_v24 }
 0x11d   : > { %1055 = vmatpush.xpose.msra.mxu0 %v3803_v46  ;;  %1102 = vmatpush.xpose.msra.mxu1 %v3749_v43  ;;  %v5915_v43 = vand.u32 4294901760, %v3901_v35  ;;  %v298_v46 = vld [vmem:[%s3571_s21 + $0x1d0] sm:$0xff] }
 0x11e   : > { %1214 = vmatpush.xpose.msra.mxu3 %v3784_v22 }
 0x11f   : > { %1151 = vmatpush.xpose.msra.mxu2 %v5913_v52 }
 0x121   : > { %1058 = vmatpush.xpose.msra.mxu0 %v3822_v27  ;;  %1104 = vmatpush.xpose.msra.mxu1 %v3769_v63  ;;  %v5914_v27 = vand.u32 4294901760, %v3885_v14  ;;  %v302_v63 = vld [vmem:[%s3571_s21 + $0x1f0] sm:$0xff] }
 0x122   : > { %1216 = vmatpush.xpose.msra.mxu3 %v3805_v51  ;;  %v4135_v9 = vand.u32 4294901760, %v302_v63 }
 0x123   : > { %1155 = vmatpush.xpose.msra.mxu2 %v966_v55  ;;  %v4154_v55 = vand.u32 4294901760, %v298_v46 }
 0x124   : > { %v4146_v45 = vsub.f32 %v302_v63, %v4135_v9 }
 0x125   : > { %1061 = vmatpush.xpose.msra.mxu0 %v3845_v0  ;;  %1106 = vmatpush.xpose.msra.mxu1 %v3784_v22  ;;  %v300_v22 = vld [vmem:[%s3571_s21 + $0x1e0] sm:$0xff] }
 0x126   : > { %1218 = vmatpush.xpose.msra.mxu3 %v3828_v39  ;;  %v4143_v30 = vand.u32 4294901760, %v300_v22  ;;  %v5836_v0 = vand.u32 4294901760, %v4146_v45 }
 0x127   : > { %1159 = vmatpush.xpose.msra.mxu2 %v972_v7 }
 0x128   : > { %v4158_v7 = vsub.f32 %v300_v22, %v4143_v30 }
 0x129   : > { %1064 = vmatpush.xpose.msra.mxu0 %v3859_v33  ;;  %1108 = vmatpush.xpose.msra.mxu1 %v3805_v51  ;;  %v3524_v51 = vmov 0   ;;  %v296_v33 = vld [vmem:[%s3571_s21 + $0x1c0] sm:$0xff] }
 0x12a   : > { %1220 = vmatpush.xpose.msra.mxu3 %v3847_v6  ;;  %3466 = vset.pattern.permute.xlu0 %v3524_v51  ;;  %v280_v51 = vld [vmem:[%s3571_s21 + $0x140] sm:$0xff] }
 0x12b   : > { %1163 = vmatpush.xpose.msra.mxu2 %v978_v31  ;;  %v4170_v31 = vand.u32 4294901760, %v296_v33 }
 0x12d   : > { %1067 = vmatpush.xpose.msra.mxu0 %v3876_v3  ;;  %1110 = vmatpush.xpose.msra.mxu1 %v3828_v39  ;;  %v5835_v3 = vand.u32 4294901760, %v4158_v7 }
 0x12e   : > { %1222 = vmatpush.xpose.msra.mxu3 %v3861_v1 }
 0x12f   : > { %1167 = vmatpush.xpose.msra.mxu2 %v984_v18 }
 0x131   : > { %1070 = vmatpush.xpose.msra.mxu0 %v3885_v14  ;;  %1112 = vmatpush.xpose.msra.mxu1 %v3847_v6  ;;  %v3296_v6 = vld [vmem:[#allocation2] sm:$0xff]  ;;  %v4174_v14 = vsub.f32 %v298_v46, %v4154_v55 }
 0x132   : > { %1224 = vmatpush.xpose.msra.mxu3 %v3869_v10  ;;  %v3297_v39 = vadd.f32 0.25, %v3296_v6  ;;  %v4278_v6 = vand.u32 4294901760, %v280_v51 }
 0x133   : > { %1171 = vmatpush.xpose.msra.mxu2 %v5914_v27 }
 0x134   : > { %3300 = vperm.xlu0 %3466, %v3297_v39  }
 0x135   : > { %1073 = vmatpush.xpose.msra.mxu0 %v3901_v35  ;;  %1114 = vmatpush.xpose.msra.mxu1 %v3861_v1  ;;  %v5917_v1 = vand.u32 4294901760, %v3947_v16 }
 0x136   : > { %1226 = vmatpush.xpose.msra.mxu3 %v3887_v28 }
 0x137   : > { %1175 = vmatpush.xpose.msra.mxu2 %v5915_v43  ;;  %v4260_v43 = vsub.f32 %v286_v8, %v4243_v5 }
 0x139   : > { %1076 = vmatpush.xpose.msra.mxu0 %v3924_v21  ;;  %1116 = vmatpush.xpose.msra.mxu1 %v3869_v10  ;;  %v1290_v10 = vsub.f32 %v4146_v45, %v5836_v0  ;;  %v4193_v21 = vsub.f32 %v296_v33, %v4170_v31  ;;  %v5825_v46 = vand.u32 4294901760, %v4260_v43 }
 0x13a   : > { %1228 = vmatpush.xpose.msra.mxu3 %v3903_v49 }
 0x13b   : > { %1179 = vmatpush.xpose.msra.mxu2 %v5916_v61  ;;  %v1291_v35 = vand.u32 4294901760, %v1290_v10  ;;  %v282_v61 = vld [vmem:[%s3571_s21 + $0x150] sm:$0xff]  ;;  %v1338_v10 = vsub.f32 %v4260_v43, %v5825_v46 }
 0x13c   : > { %v4272_v22 = vand.u32 4294901760, %v282_v61 }
 0x13d   : > { %1079 = vmatpush.xpose.msra.mxu0 %v3947_v16  ;;  %1118 = vmatpush.xpose.msra.mxu1 %v3887_v28  ;;  %v294_v28 = vld [vmem:[%s3571_s21 + $0x1b0] sm:$0xff] }
 0x13e   : > { %1230 = vmatpush.xpose.msra.mxu3 %v3926_v57  ;;  %v4184_v18 = vand.u32 4294901760, %v294_v28 }
 0x13f   : > { %1183 = vmatpush.xpose.msra.mxu2 %v5917_v1  ;;  %v4266_v1 = vsub.f32 %v284_v53, %v4252_v17 }
 0x141   : > { %1082 = vmatpush.xpose.msra.mxu0 %v3969_v12  ;;  %1120 = vmatpush.xpose.msra.mxu1 %v3903_v49  ;;  %v1296_v49 = vsub.f32 %v4158_v7, %v5835_v3  ;;  %v5833_v12 = vand.u32 4294901760, %v4174_v14  ;;  %v5823_v39 = vand.u32 4294901760, %v4266_v1  ;;  %v291_v3 = vld [vmem:[%s3571_s21 + $0x198] sm:$0xff] }
 0x142   : > { %1232 = vmatpush.xpose.msra.mxu3 %v3949_v41 }
 0x143   : > { %1187 = vmatpush.xpose.msra.mxu2 %v1014_v44  ;;  %v1297_v16 = vand.u32 4294901760, %v1296_v49  ;;  %v1344_v49 = vsub.f32 %v4266_v1, %v5823_v39 }
 0x145   : > { %1085 = vmatpush.xpose.msra.mxu0 %v3979_v23  ;;  %1122 = vmatpush.xpose.msra.mxu1 %v3926_v57  ;;  %v292_v57 = vld [vmem:[%s3571_s21 + $0x1a0] sm:$0xff]  ;;  %v290_v23 = vld [vmem:[%s3571_s21 + $0x190] sm:$0xff] }
 0x146   : > { %1234 = vmatpush.xpose.msra.mxu3 %v3962_v36 }
 0x147   : > { %1191 = vmatpush.xpose.msra.mxu2 %v5918_v13 }
 0x149   : > { %1088 = vmatpush.xpose.msra.mxu0 %v3998_v59  ;;  %1124 = vmatpush.xpose.msra.mxu1 %v3949_v41  ;;  %v1302_v41 = vsub.f32 %v4174_v14, %v5833_v12  ;;  %v5919_v12 = vand.u32 4294901760, %v4146_v45 }
 0x14a   : > { %1236 = vmatpush.xpose.msra.mxu3 %v3985_v19 }
 0x14b   : > { %1195 = vmatpush.xpose.msra.mxu2 %v1026_v20  ;;  %v1303_v59 = vand.u32 4294901760, %v1302_v41 }
 0x14d   : > { %1091 = vmatpush.xpose.msra.mxu0 %v4015_v38  ;;  %1126 = vmatpush.xpose.msra.mxu1 %v3962_v36  ;;  %v4206_v36 = vand.u32 4294901760, %v292_v57  ;;  %v4218_v38 = vand.u32 4294901760, %v290_v23 }
 0x14e   : > { %1238 = vmatpush.xpose.msra.mxu3 %v4000_v42 }
 0x14f   : > { %1199 = vmatpush.xpose.msra.mxu2 %v1032_v60  ;;  %v288_v60 = vld [vmem:[%s3571_s21 + $0x180] sm:$0xff] }
 0x150   : > { %v4230_v58 = vand.u32 4294901760, %v288_v60 }
 0x151   : > { %1094 = vmatpush.xpose.msra.mxu0 %v4029_v26  ;;  %1128 = vmatpush.xpose.msra.mxu1 %v3985_v19  ;;  %v4200_v19 = vsub.f32 %v294_v28, %v4184_v18  ;;  %v4286_v28 = vsub.f32 %v282_v61, %v4272_v22 }
 0x152   : > { %1240 = vmatpush.xpose.msra.mxu3 %v4017_v25  ;;  %v4247_v4 = vsub.f32 %v288_v60, %v4230_v58  ;;  %v276_v60 = vld [vmem:[%s3571_s21 + $0x120] sm:$0xff] }
 0x153   : > { %1203 = vmatpush.xpose.msra.mxu2 %v1038_v32  ;;  %v5830_v44 = vand.u32 4294901760, %v4200_v19  ;;  %v4234_v32 = vsub.f32 %v290_v23, %v4218_v38  ;;  %v5822_v23 = vand.u32 4294901760, %v4286_v28  ;;  %v4312_v61 = vand.u32 4294901760, %v276_v60 }
 0x154   : > { %1097 = vmatmul.f32.vlgmr.msra.gmra.mxu0 %v4042_v2  ;;  %v5826_v27 = vand.u32 4294901760, %v4247_v4 }
 0x155   : > { %1247 = vmatpush.xpose.msrb.mxu0 %v4135_v9  ;;  %1130 = vmatpush.xpose.msra.mxu1 %v4000_v42  ;;  %v5831_v42 = vand.u32 4294901760, %v4193_v21  ;;  %v1314_v26 = vsub.f32 %v4200_v19, %v5830_v44  ;;  %v5827_v56 = vand.u32 4294901760, %v4234_v32 }
 0x156   : > { %1443 = vmatpush.xpose.msrb.mxu3 %v4135_v9  ;;  %1205 = vmatmul.f32.vlgmr.msra.gmra.mxu2 %v4031_v15  ;;  %v1332_v13 = vsub.f32 %v4247_v4, %v5826_v27 }
 0x157   : > { %1390 = vmatpush.xpose.msrb.mxu2 %v4146_v45  ;;  %1242 = vmatmul.f32.vlgmr.msra.gmra.mxu3 %v4031_v15  ;;  %v1308_v20 = vsub.f32 %v4193_v21, %v5831_v42  ;;  %v1315_v62 = vand.u32 4294901760, %v1314_v26  ;;  %v1326_v52 = vsub.f32 %v4234_v32, %v5827_v56  ;;  %v295_v56 = vld [vmem:[%s3571_s21 + $0x1b8] sm:$0xff]  ;;  %v293_v42 = vld [vmem:[%s3571_s21 + $0x1a8] sm:$0xff]  ;;  %v448_v45 = vsel %vm368_vm2, %v291_v3, 0 }
 0x158   : > { %v1333_v33 = vand.u32 4294901760, %v1332_v13 }
 0x159   : > { %1249 = vmatpush.xpose.msrb.mxu0 %v4143_v30  ;;  %1132 = vmatpush.xpose.msra.mxu1 %v4017_v25  ;;  %v4221_v25 = vsub.f32 %v292_v57, %v4206_v36  ;;  %v1309_v11 = vand.u32 4294901760, %v1308_v20  ;;  %v1327_v63 = vand.u32 4294901760, %v1326_v52  ;;  %v4295_v57 = vsub.f32 %v280_v51, %v4278_v6  ;;  %v274_v51 = vld [vmem:[%s3571_s21 + $0x110] sm:$0xff] }
 0x15a   : > { %1445 = vmatpush.xpose.msrb.mxu3 %v4143_v30  ;;  %v1350_v52 = vsub.f32 %v4286_v28, %v5822_v23 }
 0x15b   : > { %1393 = vmatpush.xpose.msrb.mxu2 %v4158_v7  ;;  %v5828_v47 = vand.u32 4294901760, %v4221_v25 }
 0x15c   : > { %1136 = vmatmul.f32.vlgmr.msra.gmra.mxu1 %v4052_v54 }
 0x15d   : > { %1251 = vmatpush.xpose.msrb.mxu0 %v4154_v55  ;;  %1292 = vmatpush.xpose.msrb.mxu1 %v1291_v35  ;;  %v1320_v37 = vsub.f32 %v4221_v25, %v5828_v47  ;;  %v278_v35 = vld [vmem:[%s3571_s21 + $0x130] sm:$0xff] }
 0x15e   : > { %1447 = vmatpush.xpose.msrb.mxu3 %v4154_v55  ;;  %v4298_v41 = vand.u32 4294901760, %v278_v35 }
 0x15f   : > { %1396 = vmatpush.xpose.msrb.mxu2 %v4174_v14  ;;  %v1321_v34 = vand.u32 4294901760, %v1320_v37  ;;  %v5821_v37 = vand.u32 4294901760, %v4295_v57 }
 0x161   : > { %1253 = vmatpush.xpose.msrb.mxu0 %v4170_v31  ;;  %1298 = vmatpush.xpose.msrb.mxu1 %v1297_v16  ;;  %v1339_v16 = vand.u32 4294901760, %v1338_v10 }
 0x162   : > { %1449 = vmatpush.xpose.msrb.mxu3 %v4170_v31 }
 0x163   : > { %1399 = vmatpush.xpose.msrb.mxu2 %v4193_v21 }
 0x165   : > { %1255 = vmatpush.xpose.msrb.mxu0 %v4184_v18  ;;  %1304 = vmatpush.xpose.msrb.mxu1 %v1303_v59  ;;  %v303_v59 = vld [vmem:[%s3571_s21 + $0x1f8] sm:$0xff]  ;;  %v703_v26 = vpop.f32.mrf.mxu1 }
 0x166   : > { %1451 = vmatpush.xpose.msrb.mxu3 %v4184_v18  ;;  %v466_v53 = vsel %vm368_vm2, %v303_v59, 0  ;;  %v1356_v59 = vsub.f32 %v4295_v57, %v5821_v37 }
 0x167   : > { %1402 = vmatpush.xpose.msrb.mxu2 %v4200_v19  ;;  %v4320_v10 = vand.u32 4294901760, %v466_v53 }
 0x169   : > { %1257 = vmatpush.xpose.msrb.mxu0 %v4206_v36  ;;  %1310 = vmatpush.xpose.msrb.mxu1 %v1309_v11 }
 0x16a   : > { %1453 = vmatpush.xpose.msrb.mxu3 %v4206_v36 }
 0x16b   : > { %1405 = vmatpush.xpose.msrb.mxu2 %v4221_v25 }
 0x16d   : > { %1259 = vmatpush.xpose.msrb.mxu0 %v4218_v38  ;;  %1316 = vmatpush.xpose.msrb.mxu1 %v1315_v62  ;;  %v602_v20 = vpop.f32.mrf.mxu0  ;;  %v757_v11 = vpop.f32.mrf.mxu2  ;;  %v1345_v62 = vand.u32 4294901760, %v1344_v49 }
 0x16e   : > { %1455 = vmatpush.xpose.msrb.mxu3 %v4218_v38  ;;  %v704_v8 = vadd.f32 %v703_v26, %v602_v20  ;;  %v1351_v20 = vand.u32 4294901760, %v1350_v52  ;;  %v4330_v26 = vand.u32 4294901760, %v274_v51  ;;  %v1357_v52 = vand.u32 4294901760, %v1356_v59 }
 0x16f   : > { %1408 = vmatpush.xpose.msrb.mxu2 %v4234_v32 }
 0x170   : > { %v758_v13 = vadd.f32 %v757_v11, %v704_v8  ;;  %v4334_v8 = vsub.f32 %v276_v60, %v4312_v61  ;;  %v4353_v39 = vsub.f32 %v274_v51, %v4330_v26 }
 0x171   : > { %1261 = vmatpush.xpose.msrb.mxu0 %v4230_v58  ;;  %1322 = vmatpush.xpose.msrb.mxu1 %v1321_v34  ;;  %v301_v34 = vld [vmem:[%s3571_s21 + $0x1e8] sm:$0xff] }
 0x172   : > { %1457 = vmatpush.xpose.msrb.mxu3 %v4230_v58  ;;  %v463_v49 = vsel %vm368_vm2, %v301_v34, 0  ;;  %v272_v34 = vld [vmem:[%s3571_s21 + $0x100] sm:$0xff]  ;;  %v5829_v23 = vand.u32 4294901760, %v4334_v8 }
 0x173   : > { %1411 = vmatpush.xpose.msrb.mxu2 %v4247_v4  ;;  %v4349_v37 = vand.u32 4294901760, %v272_v34 }
 0x174   : > { %v1368_v51 = vsub.f32 %v4334_v8, %v5829_v23 }
 0x175   : > { %1263 = vmatpush.xpose.msrb.mxu0 %v4243_v5  ;;  %1328 = vmatpush.xpose.msrb.mxu1 %v1327_v63  ;;  %v4315_v63 = vsub.f32 %v278_v35, %v4298_v41  ;;  %v299_v35 = vld [vmem:[%s3571_s21 + $0x1d8] sm:$0xff]  ;;  %v4371_v27 = vsub.f32 %v272_v34, %v4349_v37  ;;  %v454_v34 = vsel %vm368_vm2, %v295_v56, 0 }
 0x176   : > { %1459 = vmatpush.xpose.msrb.mxu3 %v4243_v5  ;;  %v1369_v23 = vand.u32 4294901760, %v1368_v51  ;;  %v4401_v51 = vand.u32 4294901760, %v454_v34 }
 0x177   : > { %1414 = vmatpush.xpose.msrb.mxu2 %v4260_v43  ;;  %v5824_v11 = vand.u32 4294901760, %v4315_v63  ;;  %v5840_v44 = vand.u32 4294901760, %v4371_v27 }
 0x179   : > { %1265 = vmatpush.xpose.msrb.mxu0 %v4252_v17  ;;  %1334 = vmatpush.xpose.msrb.mxu1 %v1333_v33  ;;  %v796_v33 = vpop.f32.mrf.mxu3  ;;  %v1362_v60 = vsub.f32 %v4315_v63, %v5824_v11 }
 0x17a   : > { %1461 = vmatpush.xpose.msrb.mxu3 %v4252_v17 }
 0x17b   : > { %1417 = vmatpush.xpose.msrb.mxu2 %v4266_v1  ;;  %v1363_v46 = vand.u32 4294901760, %v1362_v60 }
 0x17d   : > { %1267 = vmatpush.xpose.msrb.mxu0 %v4272_v22  ;;  %1340 = vmatpush.xpose.msrb.mxu1 %v1339_v16  ;;  %v4323_v16 = vadd.f32 %v796_v33, %v758_v13  ;;  %v4338_v13 = vand.u32 4294901760, %v463_v49  ;;  %v4342_v33 = vsub.f32 %v466_v53, %v4320_v10  ;;  %v297_v53 = vld [vmem:[%s3571_s21 + $0x1c8] sm:$0xff] }
 0x17e   : > { %1463 = vmatpush.xpose.msrb.mxu3 %v4272_v22  ;;  %v457_v11 = vsel %vm368_vm2, %v297_v53, 0 }
 0x17f   : > { %1420 = vmatpush.xpose.msrb.mxu2 %v4286_v28  ;;  %v4358_v59 = vsub.f32 %v463_v49, %v4338_v13  ;;  %v5834_v49 = vand.u32 4294901760, %v4353_v39  ;;  %v4383_v60 = vand.u32 4294901760, %v457_v11 }
 0x181   : > { %1269 = vmatpush.xpose.msrb.mxu0 %v4278_v6  ;;  %1346 = vmatpush.xpose.msrb.mxu1 %v1345_v62  ;;  %v460_v62 = vsel %vm368_vm2, %v299_v35, 0  ;;  %v5837_v47 = vand.u32 4294901760, %v4358_v59 }
 0x182   : > { %1465 = vmatpush.xpose.msrb.mxu3 %v4278_v6  ;;  %v4360_v35 = vand.u32 4294901760, %v460_v62 }
 0x183   : > { %1423 = vmatpush.xpose.msrb.mxu2 %v4295_v57 }
 0x184   : > { %v4377_v53 = vsub.f32 %v460_v62, %v4360_v35  ;;  %v1374_v62 = vsub.f32 %v4353_v39, %v5834_v49  ;;  %v451_v49 = vsel %vm368_vm2, %v293_v42, 0 }
 0x185   : > { %1271 = vmatpush.xpose.msrb.mxu0 %v4298_v41  ;;  %1352 = vmatpush.xpose.msrb.mxu1 %v1351_v20  ;;  %v5832_v20 = vand.u32 4294901760, %v4342_v33  ;;  %v4420_v54 = vand.u32 4294901760, %v451_v49 }
 0x186   : > { %1467 = vmatpush.xpose.msrb.mxu3 %v4298_v41  ;;  %v1375_v0 = vand.u32 4294901760, %v1374_v62  ;;  %v4418_v62 = vsub.f32 %v454_v34, %v4401_v51  ;;  %v4429_v34 = vand.u32 4294901760, %v448_v45 }
 0x187   : > { %1426 = vmatpush.xpose.msrb.mxu2 %v4315_v63 }
 0x189   : > { %1273 = vmatpush.xpose.msrb.mxu0 %v4312_v61  ;;  %1358 = vmatpush.xpose.msrb.mxu1 %v1357_v52  ;;  %v1631_v52 = vsub.f32 %v4342_v33, %v5832_v20  ;;  %v1637_v20 = vsub.f32 %v4358_v59, %v5837_v47  ;;  %v1380_v47 = vsub.f32 %v4371_v27, %v5840_v44 }
 0x18a   : > { %1469 = vmatpush.xpose.msrb.mxu3 %v4312_v61 }
 0x18b   : > { %1429 = vmatpush.xpose.msrb.mxu2 %v4334_v8  ;;  %v1632_v56 = vand.u32 4294901760, %v1631_v52  ;;  %v5920_v52 = vand.u32 4294901760, %v4377_v53 }
 0x18d   : > { %1275 = vmatpush.xpose.msrb.mxu0 %v4330_v26  ;;  %1364 = vmatpush.xpose.msrb.mxu1 %v1363_v46  ;;  %v4399_v46 = vsub.f32 %v457_v11, %v4383_v60  ;;  %v1638_v11 = vand.u32 4294901760, %v1637_v20  ;;  %v1643_v42 = vsub.f32 %v4377_v53, %v5920_v52  ;;  %v1381_v20 = vand.u32 4294901760, %v1380_v47 }
 0x18e   : > { %1471 = vmatpush.xpose.msrb.mxu3 %v4330_v26  ;;  %v4437_v47 = vsub.f32 %v451_v49, %v4420_v54 }
 0x18f   : > { %1432 = vmatpush.xpose.msrb.mxu2 %v4353_v39  ;;  %v1644_v52 = vand.u32 4294901760, %v1643_v42  ;;  %v287_v42 = vld [vmem:[%s3571_s21 + $0x178] sm:$0xff] }
 0x191   : > { %1277 = vmatpush.xpose.msrb.mxu0 %v4349_v37  ;;  %1370 = vmatpush.xpose.msrb.mxu1 %v1369_v23  ;;  %v5843_v23 = vand.u32 4294901760, %v4399_v46  ;;  %v865_v3 = vpop.f32.mrf.mxu0 }
 0x192   : > { %1473 = vmatpush.xpose.msrb.mxu3 %v4349_v37 }
 0x193   : > { %1435 = vmatpush.xpose.msrb.mxu2 %v4371_v27  ;;  %v1649_v44 = vsub.f32 %v4399_v46, %v5843_v23 }
 0x194   : > { %1283 = vmatmul.f32.vlgmr.msrb.gmra.mxu0 %v3957_v50 }
 0x195   : > { %1484 = vmatpush.xpose.msra.mxu0 %v5919_v12  ;;  %v289_v12 = vld [vmem:[%s3571_s21 + $0x188] sm:$0xff]  ;;  %1376 = vmatpush.xpose.msrb.mxu1 %v1375_v0  ;;  %v5844_v0 = vand.u32 4294901760, %v4418_v62  ;;  %v1650_v49 = vand.u32 4294901760, %v1649_v44  ;;  %v283_v44 = vld [vmem:[%s3571_s21 + $0x158] sm:$0xff] }
 0x196   : > { %1633 = vmatpush.xpose.msra.mxu3 %v1632_v56  ;;  %v5921_v56 = vand.u32 4294901760, %v4158_v7  ;;  %1438 = vmatmul.f32.vlgmr.msrb.gmra.mxu2 %v3929_v29  ;;  %v866_v7 = vadd.f32 %v865_v3, %v4323_v16  ;;  %v5845_v16 = vand.u32 4294901760, %v4437_v47 }
 0x197   : > { %1588 = vmatpush.xpose.msra.mxu2 %v4320_v10  ;;  %1477 = vmatmul.f32.vlgmr.msrb.gmra.mxu3 %v3936_v48  ;;  %v445_v48 = vsel %vm368_vm2, %v289_v12, 0  ;;  %v1655_v12 = vsub.f32 %v4418_v62, %v5844_v0 }
 0x198   : > { %v4449_v23 = vand.u32 4294901760, %v445_v48 }
 0x199   : > { %1488 = vmatpush.xpose.msra.mxu0 %v5921_v56  ;;  %1382 = vmatpush.xpose.msrb.mxu1 %v1381_v20  ;;  %v4447_v56 = vsub.f32 %v448_v45, %v4429_v34  ;;  %v5923_v45 = vand.u32 4294901760, %v4193_v21  ;;  %v943_v3 = vpop.f32.mrf.mxu2 }
 0x19a   : > { %1639 = vmatpush.xpose.msra.mxu3 %v1638_v11  ;;  %v5922_v11 = vand.u32 4294901760, %v4174_v14  ;;  %v442_v14 = vsel %vm368_vm2, %v287_v42, 0  ;;  %v4464_v20 = vsub.f32 %v445_v48, %v4449_v23  ;;  %v1661_v42 = vsub.f32 %v4437_v47, %v5845_v16 }
 0x19b   : > { %1590 = vmatpush.xpose.msra.mxu2 %v4338_v13  ;;  %v4469_v0 = vand.u32 4294901760, %v442_v14  ;;  %v5924_v48 = vand.u32 4294901760, %v4200_v19 }
 0x19c   : > { %1384 = vmatmul.f32.vlgmr.msrb.gmra.mxu1 %v3914_v24  ;;  %v1672_v29 = vand.u32 4294901760, %v4464_v20  ;;  %v1662_v50 = vand.u32 4294901760, %v1661_v42 }
 0x19d   : > { %1492 = vmatpush.xpose.msra.mxu0 %v5922_v11  ;;  %1551 = vmatpush.xpose.msra.mxu1 %v4135_v9  ;;  %v285_v9 = vld [vmem:[%s3571_s21 + $0x168] sm:$0xff]  ;;  %v1656_v11 = vand.u32 4294901760, %v1655_v12  ;;  %v5925_v12 = vand.u32 4294901760, %v4447_v56 }
 0x19e   : > { %1645 = vmatpush.xpose.msra.mxu3 %v1644_v52  ;;  %v902_v52 = vpop.f32.mrf.mxu1 }
 0x19f   : > { %1592 = vmatpush.xpose.msra.mxu2 %v4360_v35  ;;  %v903_v21 = vadd.f32 %v902_v52, %v866_v7  ;;  %v1667_v16 = vsub.f32 %v4447_v56, %v5925_v12  ;;  %v4482_v7 = vsub.f32 %v442_v14, %v4469_v0  ;;  %v281_v52 = vld [vmem:[%s3571_s21 + $0x148] sm:$0xff]  ;;  %v1673_v14 = vsub.f32 %v4464_v20, %v1672_v29 }
 0x1a0   : > { %v277_v12 = vld [vmem:[%s3571_s21 + $0x128] sm:$0xff] }
 0x1a1   : > { %1496 = vmatpush.xpose.msra.mxu0 %v5923_v45  ;;  %1553 = vmatpush.xpose.msra.mxu1 %v4143_v30  ;;  %v439_v30 = vsel %vm368_vm2, %v285_v9, 0  ;;  %v1044_v45 = vpop.f32.mrf.mxu3  ;;  %v1678_v42 = vand.u32 4294901760, %v4482_v7 }
 0x1a2   : > { %1651 = vmatpush.xpose.msra.mxu3 %v1650_v49  ;;  %v944_v49 = vadd.f32 %v943_v3, %v903_v21  ;;  %v4484_v9 = vand.u32 4294901760, %v439_v30  ;;  %v5926_v3 = vand.u32 4294901760, %v4221_v25  ;;  %v279_v25 = vld [vmem:[%s3571_s21 + $0x138] sm:$0xff] }
 0x1a3   : > { %1594 = vmatpush.xpose.msra.mxu2 %v4383_v60 }
 0x1a4   : > { %v4487_v19 = vadd.f32 %v1044_v45, %v944_v49  ;;  %v4499_v21 = vsub.f32 %v439_v30, %v4484_v9  ;;  %v1679_v30 = vsub.f32 %v4482_v7, %v1678_v42 }
 0x1a5   : > { %1500 = vmatpush.xpose.msra.mxu0 %v5924_v48  ;;  %1555 = vmatpush.xpose.msra.mxu1 %v4154_v55  ;;  %v436_v55 = vsel %vm368_vm2, %v283_v44, 0  ;;  %v433_v44 = vsel %vm368_vm2, %v281_v52, 0 }
 0x1a6   : > { %1657 = vmatpush.xpose.msra.mxu3 %v1656_v11  ;;  %v1668_v11 = vand.u32 4294901760, %v1667_v16  ;;  %v4501_v45 = vand.u32 4294901760, %v436_v55  ;;  %v4509_v16 = vand.u32 4294901760, %v433_v44  ;;  %v1684_v48 = vand.u32 4294901760, %v4499_v21 }
 0x1a7   : > { %1596 = vmatpush.xpose.msra.mxu2 %v4401_v51 }
 0x1a8   : > { %v4516_v49 = vsub.f32 %v436_v55, %v4501_v45  ;;  %v4525_v52 = vsub.f32 %v433_v44, %v4509_v16  ;;  %v1685_v55 = vsub.f32 %v4499_v21, %v1684_v48 }
 0x1a9   : > { %1504 = vmatpush.xpose.msra.mxu0 %v5926_v3  ;;  %1557 = vmatpush.xpose.msra.mxu1 %v4170_v31  ;;  %v5927_v31 = vand.u32 4294901760, %v4234_v32  ;;  %v430_v32 = vsel %vm368_vm2, %v279_v25, 0  ;;  %v1680_v3 = vand.u32 4294901760, %v1679_v30  ;;  %v275_v25 = vld [vmem:[%s3571_s21 + $0x118] sm:$0xff] }
 0x1aa   : > { %1663 = vmatpush.xpose.msra.mxu3 %v1662_v50  ;;  %v1674_v50 = vand.u32 4294901760, %v1673_v14  ;;  %v4531_v14 = vand.u32 4294901760, %v430_v32  ;;  %v1696_v44 = vand.u32 4294901760, %v4525_v52 }
 0x1ab   : > { %1598 = vmatpush.xpose.msra.mxu2 %v4420_v54 }
 0x1ac   : > { %v4544_v30 = vsub.f32 %v430_v32, %v4531_v14 }
 0x1ad   : > { %1508 = vmatpush.xpose.msra.mxu0 %v5927_v31  ;;  %1559 = vmatpush.xpose.msra.mxu1 %v4184_v18  ;;  %v5928_v18 = vand.u32 4294901760, %v4247_v4  ;;  %v427_v4 = vsel %vm368_vm2, %v277_v12, 0  ;;  %v1686_v31 = vand.u32 4294901760, %v1685_v55  ;;  %v273_v12 = vld [vmem:[%s3571_s21 + $0x108] sm:$0xff] }
 0x1ae   : > { %1669 = vmatpush.xpose.msra.mxu3 %v1668_v11  ;;  %v5850_v11 = vand.u32 4294901760, %v4516_v49  ;;  %v1702_v32 = vand.u32 4294901760, %v4544_v30 }
 0x1af   : > { %1600 = vmatpush.xpose.msra.mxu2 %v4429_v34 }
 0x1b1   : > { %1512 = vmatpush.xpose.msra.mxu0 %v5928_v18  ;;  %1561 = vmatpush.xpose.msra.mxu1 %v4206_v36  ;;  %v5929_v36 = vand.u32 4294901760, %v4260_v43  ;;  %v4546_v18 = vand.u32 4294901760, %v427_v4  ;;  %v424_v43 = vsel %vm368_vm2, %v275_v25, 0  ;;  %v5931_v25 = vand.u32 4294901760, %v4286_v28 }
 0x1b2   : > { %1675 = vmatpush.xpose.msra.mxu3 %v1674_v50  ;;  %v1691_v50 = vsub.f32 %v4516_v49, %v5850_v11  ;;  %v4561_v11 = vand.u32 4294901760, %v424_v43  ;;  %v5932_v28 = vand.u32 4294901760, %v4295_v57 }
 0x1b3   : > { %1602 = vmatpush.xpose.msra.mxu2 %v4449_v23 }
 0x1b4   : > { %v1692_v55 = vand.u32 4294901760, %v1691_v50  ;;  %v4573_v50 = vsub.f32 %v424_v43, %v4561_v11 }
 0x1b5   : > { %1516 = vmatpush.xpose.msra.mxu0 %v5929_v36  ;;  %1563 = vmatpush.xpose.msra.mxu1 %v4218_v38  ;;  %v5930_v38 = vand.u32 4294901760, %v4266_v1  ;;  %v4559_v36 = vsub.f32 %v427_v4, %v4546_v18  ;;  %v421_v1 = vsel %vm368_vm2, %v273_v12, 0 }
 0x1b6   : > { %1681 = vmatpush.xpose.msra.mxu3 %v1680_v3  ;;  %v1697_v3 = vsub.f32 %v4525_v52, %v1696_v44 }
 0x1b7   : > { %1604 = vmatpush.xpose.msra.mxu2 %v4469_v0  ;;  %v1708_v4 = vand.u32 4294901760, %v4559_v36 }
 0x1b9   : > { %1520 = vmatpush.xpose.msra.mxu0 %v5930_v38  ;;  %1565 = vmatpush.xpose.msra.mxu1 %v4230_v58  ;;  %v1698_v58 = vand.u32 4294901760, %v1697_v3  ;;  %v4575_v38 = vand.u32 4294901760, %v421_v1  ;;  %v1709_v12 = vsub.f32 %v4559_v36, %v1708_v4  ;;  %v1714_v3 = vand.u32 4294901760, %v4573_v50 }
 0x1ba   : > { %1687 = vmatpush.xpose.msra.mxu3 %v1686_v31  ;;  %v1703_v31 = vsub.f32 %v4544_v30, %v1702_v32 }
 0x1bb   : > { %1606 = vmatpush.xpose.msra.mxu2 %v4484_v9  ;;  %v4586_v43 = vsub.f32 %v421_v1, %v4575_v38  ;;  %v1715_v57 = vsub.f32 %v4573_v50, %v1714_v3  ;;  %v5934_v1 = vand.u32 4294901760, %v4334_v8  ;;  %v5936_v8 = vand.u32 4294901760, %v4371_v27 }
 0x1bd   : > { %1524 = vmatpush.xpose.msra.mxu0 %v5931_v25  ;;  %1567 = vmatpush.xpose.msra.mxu1 %v4243_v5  ;;  %v1704_v5 = vand.u32 4294901760, %v1703_v31  ;;  %v1720_v25 = vand.u32 4294901760, %v4586_v43 }
 0x1be   : > { %1693 = vmatpush.xpose.msra.mxu3 %v1692_v55  ;;  %v5933_v55 = vand.u32 4294901760, %v4315_v63  ;;  %v1716_v63 = vand.u32 4294901760, %v1715_v57 }
 0x1bf   : > { %1608 = vmatpush.xpose.msra.mxu2 %v4501_v45 }
 0x1c1   : > { %1528 = vmatpush.xpose.msra.mxu0 %v5932_v28  ;;  %1569 = vmatpush.xpose.msra.mxu1 %v4252_v17  ;;  %v1710_v17 = vand.u32 4294901760, %v1709_v12 }
 0x1c2   : > { %1699 = vmatpush.xpose.msra.mxu3 %v1698_v58  ;;  %v5935_v58 = vand.u32 4294901760, %v4353_v39 }
 0x1c3   : > { %1610 = vmatpush.xpose.msra.mxu2 %v4509_v16 }
 0x1c5   : > { %1532 = vmatpush.xpose.msra.mxu0 %v5933_v55  ;;  %1571 = vmatpush.xpose.msra.mxu1 %v4272_v22  ;;  %v1721_v22 = vsub.f32 %v4586_v43, %v1720_v25 }
 0x1c6   : > { %1705 = vmatpush.xpose.msra.mxu3 %v1704_v5 }
 0x1c7   : > { %1612 = vmatpush.xpose.msra.mxu2 %v4531_v14  ;;  %v1722_v31 = vand.u32 4294901760, %v1721_v22 }
 0x1c9   : > { %1536 = vmatpush.xpose.msra.mxu0 %v5934_v1  ;;  %1573 = vmatpush.xpose.msra.mxu1 %v4278_v6  ;;  %v5937_v6 = vand.u32 4294901760, %v4342_v33 }
 0x1ca   : > { %1711 = vmatpush.xpose.msra.mxu3 %v1710_v17 }
 0x1cb   : > { %1614 = vmatpush.xpose.msra.mxu2 %v4546_v18 }
 0x1cd   : > { %1540 = vmatpush.xpose.msra.mxu0 %v5935_v58  ;;  %1575 = vmatpush.xpose.msra.mxu1 %v4298_v41  ;;  %v5938_v41 = vand.u32 4294901760, %v4358_v59 }
 0x1ce   : > { %1717 = vmatpush.xpose.msra.mxu3 %v1716_v63  ;;  %v318_v63 = vld [vmem:[%s3571_s21 + $0x270] sm:$0xff] }
 0x1cf   : > { %1616 = vmatpush.xpose.msra.mxu2 %v4561_v11 }
 0x1d1   : > { %1544 = vmatpush.xpose.msra.mxu0 %v5936_v8  ;;  %1577 = vmatpush.xpose.msra.mxu1 %v4312_v61  ;;  %v1098_v27 = vpop.f32.mrf.mxu0  ;;  %v5939_v61 = vand.u32 4294901760, %v4377_v53  ;;  %v4792_v8 = vand.u32 4294901760, %v318_v63 }
 0x1d2   : > { %1723 = vmatpush.xpose.msra.mxu3 %v1722_v31  ;;  %v1099_v39 = vadd.f32 %v1098_v27, %v4487_v19  ;;  %v316_v27 = vld [vmem:[%s3571_s21 + $0x260] sm:$0xff] }
 0x1d3   : > { %1618 = vmatpush.xpose.msra.mxu2 %v4575_v38 }
 0x1d4   : > { %1546 = vmatmul.f32.vlgmr.msra.gmra.mxu0 %v3914_v24 }
 0x1d5   : > { %1731 = vmatpush.xpose.msrb.mxu0 %v4342_v33  ;;  %1579 = vmatpush.xpose.msra.mxu1 %v4330_v26 }
 0x1d6   : > { %1892 = vmatpush.xpose.msrb.mxu3 %v4320_v10  ;;  %1624 = vmatmul.f32.vlgmr.msra.gmra.mxu2 %v4065_v40 }
 0x1d7   : > { %1825 = vmatpush.xpose.msrb.mxu2 %v5937_v6  ;;  %1725 = vmatmul.f32.vlgmr.msra.gmra.mxu3 %v4031_v15 }
 0x1d9   : > { %1734 = vmatpush.xpose.msrb.mxu0 %v4358_v59  ;;  %1581 = vmatpush.xpose.msra.mxu1 %v4349_v37  ;;  %v1137_v26 = vpop.f32.mrf.mxu1  ;;  %v1206_v33 = vpop.f32.mrf.mxu2  ;;  %v5940_v59 = vand.u32 4294901760, %v4399_v46 }
 0x1da   : > { %1894 = vmatpush.xpose.msrb.mxu3 %v4338_v13  ;;  %v1138_v37 = vadd.f32 %v1137_v26, %v1099_v39 }
 0x1db   : > { %1829 = vmatpush.xpose.msrb.mxu2 %v5938_v41 }
 0x1dc   : > { %1583 = vmatmul.f32.vlgmr.msra.gmra.mxu1 %v3914_v24  ;;  %v1207_v19 = vadd.f32 %v1206_v33, %v1138_v37  ;;  %v4808_v33 = vsub.f32 %v318_v63, %v4792_v8  ;;  %v314_v37 = vld [vmem:[%s3571_s21 + $0x250] sm:$0xff] }
 0x1dd   : > { %1737 = vmatpush.xpose.msrb.mxu0 %v4377_v53  ;;  %1784 = vmatpush.xpose.msrb.mxu1 %v4320_v10  ;;  %v1243_v10 = vpop.f32.mrf.mxu3 }
 0x1de   : > { %1896 = vmatpush.xpose.msrb.mxu3 %v4360_v35  ;;  %v4640_v53 = vadd.f32 %v1243_v10, %v1207_v19  ;;  %v4817_v19 = vand.u32 4294901760, %v314_v37 }
 0x1df   : > { %1833 = vmatpush.xpose.msrb.mxu2 %v5939_v61  ;;  %v4804_v61 = vand.u32 4294901760, %v316_v27 }
 0x1e0   : > { %5941 = vst [vmem:[#allocation11_spill] sm:$0xff] %v4640_v53 }
 0x1e1   : > { %1740 = vmatpush.xpose.msrb.mxu0 %v4399_v46  ;;  %1786 = vmatpush.xpose.msrb.mxu1 %v4338_v13  ;;  %v5942_v13 = vand.u32 4294901760, %v4418_v62  ;;  %v5943_v46 = vand.u32 4294901760, %v4437_v47 }
 0x1e2   : > { %1898 = vmatpush.xpose.msrb.mxu3 %v4383_v60 }
 0x1e3   : > { %1837 = vmatpush.xpose.msrb.mxu2 %v5940_v59 }
 0x1e5   : > { %1743 = vmatpush.xpose.msrb.mxu0 %v4418_v62  ;;  %1788 = vmatpush.xpose.msrb.mxu1 %v4360_v35  ;;  %v5944_v35 = vand.u32 4294901760, %v4447_v56 }
 0x1e6   : > { %1900 = vmatpush.xpose.msrb.mxu3 %v4401_v51 }
 0x1e7   : > { %1841 = vmatpush.xpose.msrb.mxu2 %v5942_v13  ;;  %v5855_v13 = vand.u32 4294901760, %v4808_v33 }
 0x1e9   : > { %1746 = vmatpush.xpose.msrb.mxu0 %v4437_v47  ;;  %1790 = vmatpush.xpose.msrb.mxu1 %v4383_v60 }
 0x1ea   : > { %1902 = vmatpush.xpose.msrb.mxu3 %v4420_v54 }
 0x1eb   : > { %1845 = vmatpush.xpose.msrb.mxu2 %v5943_v46  ;;  %v4821_v46 = vsub.f32 %v316_v27, %v4804_v61 }
 0x1ed   : > { %1749 = vmatpush.xpose.msrb.mxu0 %v4447_v56  ;;  %1792 = vmatpush.xpose.msrb.mxu1 %v4401_v51  ;;  %v332_v51 = vld [vmem:[%s3571_s21 + $0x2e0] sm:$0xff] }
 0x1ee   : > { %1904 = vmatpush.xpose.msrb.mxu3 %v4429_v34 }
 0x1ef   : > { %1849 = vmatpush.xpose.msrb.mxu2 %v5944_v35  ;;  %v312_v35 = vld [vmem:[%s3571_s21 + $0x240] sm:$0xff] }
 0x1f1   : > { %1752 = vmatpush.xpose.msrb.mxu0 %v4464_v20  ;;  %1794 = vmatpush.xpose.msrb.mxu1 %v4420_v54  ;;  %v334_v54 = vld [vmem:[%s3571_s21 + $0x2f0] sm:$0xff]  ;;  %v328_v20 = vld [vmem:[%s3571_s21 + $0x2c0] sm:$0xff] }
 0x1f2   : > { %1906 = vmatpush.xpose.msrb.mxu3 %v4449_v23  ;;  %v4683_v60 = vand.u32 4294901760, %v334_v54 }
 0x1f3   : > { %1853 = vmatpush.xpose.msrb.mxu2 %v1672_v29  ;;  %v5945_v29 = vand.u32 4294901760, %v4516_v49 }
 0x1f4   : > { %v4694_v62 = vsub.f32 %v334_v54, %v4683_v60 }
 0x1f5   : > { %1755 = vmatpush.xpose.msrb.mxu0 %v4482_v7  ;;  %1796 = vmatpush.xpose.msrb.mxu1 %v4429_v34  ;;  %v330_v34 = vld [vmem:[%s3571_s21 + $0x2d0] sm:$0xff] }
 0x1f6   : > { %1908 = vmatpush.xpose.msrb.mxu3 %v4469_v0  ;;  %v4705_v47 = vand.u32 4294901760, %v330_v34  ;;  %v1971_v56 = vand.u32 4294901760, %v4694_v62 }
 0x1f7   : > { %1857 = vmatpush.xpose.msrb.mxu2 %v1678_v42  ;;  %v4719_v42 = vand.u32 4294901760, %v328_v20 }
 0x1f9   : > { %1758 = vmatpush.xpose.msrb.mxu0 %v4499_v21  ;;  %1798 = vmatpush.xpose.msrb.mxu1 %v4449_v23  ;;  %v4690_v23 = vand.u32 4294901760, %v332_v51  ;;  %v4722_v21 = vsub.f32 %v330_v34, %v4705_v47  ;;  %v5854_v34 = vand.u32 4294901760, %v4821_v46 }
 0x1fa   : > { %1910 = vmatpush.xpose.msrb.mxu3 %v4484_v9 }
 0x1fb   : > { %1861 = vmatpush.xpose.msrb.mxu2 %v1684_v48 }
 0x1fd   : > { %1761 = vmatpush.xpose.msrb.mxu0 %v4516_v49  ;;  %1800 = vmatpush.xpose.msrb.mxu1 %v4469_v0  ;;  %v4702_v0 = vsub.f32 %v332_v51, %v4690_v23  ;;  %v2020_v51 = vsub.f32 %v4808_v33, %v5855_v13 }
 0x1fe   : > { %1912 = vmatpush.xpose.msrb.mxu3 %v4501_v45 }
 0x1ff   : > { %1865 = vmatpush.xpose.msrb.mxu2 %v5945_v29  ;;  %v1977_v7 = vand.u32 4294901760, %v4702_v0  ;;  %v4826_v29 = vand.u32 4294901760, %v312_v35 }
 0x201   : > { %1764 = vmatpush.xpose.msrb.mxu0 %v4525_v52  ;;  %1802 = vmatpush.xpose.msrb.mxu1 %v4484_v9  ;;  %v1972_v9 = vsub.f32 %v4694_v62, %v1971_v56  ;;  %v5867_v52 = vand.u32 4294901760, %v4722_v21 }
 0x202   : > { %1914 = vmatpush.xpose.msrb.mxu3 %v4509_v16 }
 0x203   : > { %1869 = vmatpush.xpose.msrb.mxu2 %v1696_v44  ;;  %v1973_v48 = vand.u32 4294901760, %v1972_v9  ;;  %v310_v9 = vld [vmem:[%s3571_s21 + $0x230] sm:$0xff] }
 0x205   : > { %1767 = vmatpush.xpose.msrb.mxu0 %v4544_v30  ;;  %1804 = vmatpush.xpose.msrb.mxu1 %v4501_v45  ;;  %v326_v45 = vld [vmem:[%s3571_s21 + $0x2b0] sm:$0xff]  ;;  %v1984_v30 = vsub.f32 %v4722_v21, %v5867_v52  ;;  %v5949_v52 = vld [vmem:[#allocation7_spill] sm:$0xff] }
 0x206   : > { %1916 = vmatpush.xpose.msrb.mxu3 %v4531_v14  ;;  %v4737_v49 = vand.u32 4294901760, %v326_v45 }
 0x207   : > { %1873 = vmatpush.xpose.msrb.mxu2 %v1702_v32  ;;  %v1985_v28 = vand.u32 4294901760, %v1984_v30  ;;  %v335_v30 = vld [vmem:[%s3571_s21 + $0x2f8] sm:$0xff] }
 0x209   : > { %1770 = vmatpush.xpose.msrb.mxu0 %v4559_v36  ;;  %1806 = vmatpush.xpose.msrb.mxu1 %v4509_v16  ;;  %v1978_v16 = vsub.f32 %v4702_v0, %v1977_v7  ;;  %v4755_v36 = vsub.f32 %v326_v45, %v4737_v49  ;;  %v4840_v45 = vsub.f32 %v312_v35, %v4826_v29 }
 0x20a   : > { %1918 = vmatpush.xpose.msrb.mxu3 %v4546_v18 }
 0x20b   : > { %1877 = vmatpush.xpose.msrb.mxu2 %v1708_v4  ;;  %v1979_v44 = vand.u32 4294901760, %v1978_v16  ;;  %v322_v4 = vld [vmem:[%s3571_s21 + $0x290] sm:$0xff]  ;;  %v5862_v12 = vand.u32 4294901760, %v4755_v36  ;;  %v2021_v16 = vand.u32 4294901760, %v2020_v51  ;;  %v304_v51 = vld [vmem:[%s3571_s21 + $0x200] sm:$0xff] }
 0x20d   : > { %1773 = vmatpush.xpose.msrb.mxu0 %v4573_v50  ;;  %1808 = vmatpush.xpose.msrb.mxu1 %v4531_v14  ;;  %v4741_v14 = vsub.f32 %v328_v20, %v4719_v42  ;;  %v5946_v50 = vld [vmem:[#allocation10_spill] sm:$0xff]  ;;  %v1996_v57 = vsub.f32 %v4755_v36, %v5862_v12  ;;  %v4834_v20 = vsub.f32 %v314_v37, %v4817_v19  ;;  %v331_v37 = vld [vmem:[%s3571_s21 + $0x2d8] sm:$0xff] }
 0x20e   : > { %1920 = vmatpush.xpose.msrb.mxu3 %v4561_v11  ;;  %v323_v12 = vld [vmem:[%s3571_s21 + $0x298] sm:$0xff] }
 0x20f   : > { %1881 = vmatpush.xpose.msrb.mxu2 %v1714_v3  ;;  %v5863_v32 = vand.u32 4294901760, %v4741_v14  ;;  %v1997_v58 = vand.u32 4294901760, %v1996_v57 }
 0x211   : > { %1776 = vmatpush.xpose.msrb.mxu0 %v4586_v43  ;;  %1810 = vmatpush.xpose.msrb.mxu1 %v4546_v18  ;;  %v1990_v5 = vsub.f32 %v4741_v14, %v5863_v32  ;;  %v320_v43 = vld [vmem:[%s3571_s21 + $0x280] sm:$0xff] }
 0x212   : > { %1922 = vmatpush.xpose.msrb.mxu3 %v4575_v38 }
 0x213   : > { %1885 = vmatpush.xpose.msrb.mxu2 %v1720_v25  ;;  %v1991_v17 = vand.u32 4294901760, %v1990_v5  ;;  %v4781_v25 = vand.u32 4294901760, %v320_v43  ;;  %v514_v5 = vsel %vm368_vm2, %v335_v30, 0 }
 0x214   : > { %1779 = vmatmul.f32.vlgmr.msrb.gmra.mxu0 %v4042_v2  ;;  %v4868_v27 = vand.u32 4294901760, %v514_v5 }
 0x215   : > { %1929 = vmatpush.xpose.msra.mxu0 %v4683_v60  ;;  %1812 = vmatpush.xpose.msrb.mxu1 %v4561_v11  ;;  %v324_v11 = vld [vmem:[%s3571_s21 + $0x2a0] sm:$0xff]  ;;  %v4795_v6 = vsub.f32 %v320_v43, %v4781_v25  ;;  %v333_v43 = vld [vmem:[%s3571_s21 + $0x2e8] sm:$0xff] }
 0x216   : > { %2125 = vmatpush.xpose.msra.mxu3 %v4683_v60  ;;  %1887 = vmatmul.f32.vlgmr.msrb.gmra.mxu2 %v4031_v15  ;;  %v4751_v18 = vand.u32 4294901760, %v324_v11 }
 0x217   : > { %2072 = vmatpush.xpose.msra.mxu2 %v4694_v62  ;;  %1924 = vmatmul.f32.vlgmr.msrb.gmra.mxu3 %v4031_v15  ;;  %v5857_v26 = vand.u32 4294901760, %v4795_v6  ;;  %v496_v62 = vsel %vm368_vm2, %v323_v12, 0 }
 0x218   : > { %v4769_v3 = vsub.f32 %v324_v11, %v4751_v18  ;;  %v4846_v11 = vand.u32 4294901760, %v310_v9 }
 0x219   : > { %1931 = vmatpush.xpose.msra.mxu0 %v4690_v23  ;;  %1814 = vmatpush.xpose.msrb.mxu1 %v4575_v38  ;;  %v4761_v38 = vand.u32 4294901760, %v322_v4  ;;  %v2014_v10 = vsub.f32 %v4795_v6, %v5857_v26 }
 0x21a   : > { %2127 = vmatpush.xpose.msra.mxu3 %v4690_v23  ;;  %v5860_v1 = vand.u32 4294901760, %v4769_v3 }
 0x21b   : > { %2075 = vmatpush.xpose.msra.mxu2 %v4702_v0  ;;  %v4775_v55 = vsub.f32 %v322_v4, %v4761_v38  ;;  %v2015_v54 = vand.u32 4294901760, %v2014_v10  ;;  %v308_v4 = vld [vmem:[%s3571_s21 + $0x220] sm:$0xff]  ;;  %v319_v0 = vld [vmem:[%s3571_s21 + $0x278] sm:$0xff] }
 0x21c   : > { %1818 = vmatmul.f32.vlgmr.msrb.gmra.mxu1 %v5946_v50  ;;  %v2002_v31 = vsub.f32 %v4769_v3, %v5860_v1  ;;  %v4860_v63 = vand.u32 4294901760, %v308_v4 }
 0x21d   : > { %1933 = vmatpush.xpose.msra.mxu0 %v4705_v47  ;;  %1974 = vmatpush.xpose.msra.mxu1 %v1973_v48  ;;  %v5858_v22 = vand.u32 4294901760, %v4775_v55  ;;  %v2026_v48 = vsub.f32 %v4821_v46, %v5854_v34  ;;  %v327_v34 = vld [vmem:[%s3571_s21 + $0x2b8] sm:$0xff] }
 0x21e   : > { %2129 = vmatpush.xpose.msra.mxu3 %v4705_v47  ;;  %v2003_v41 = vand.u32 4294901760, %v2002_v31  ;;  %v306_v31 = vld [vmem:[%s3571_s21 + $0x210] sm:$0xff] }
 0x21f   : > { %2078 = vmatpush.xpose.msra.mxu2 %v4722_v21  ;;  %v2008_v39 = vsub.f32 %v4775_v55, %v5858_v22  ;;  %v4876_v10 = vand.u32 4294901760, %v306_v31  ;;  %v325_v22 = vld [vmem:[%s3571_s21 + $0x2a8] sm:$0xff] }
 0x221   : > { %1935 = vmatpush.xpose.msra.mxu0 %v4719_v42  ;;  %1980 = vmatpush.xpose.msra.mxu1 %v1979_v44  ;;  %v2009_v59 = vand.u32 4294901760, %v2008_v39  ;;  %v5853_v44 = vand.u32 4294901760, %v4834_v20  ;;  %v511_v39 = vsel %vm368_vm2, %v333_v43, 0  ;;  %v4895_v43 = vand.u32 4294901760, %v304_v51 }
 0x222   : > { %2131 = vmatpush.xpose.msra.mxu3 %v4719_v42 }
 0x223   : > { %2081 = vmatpush.xpose.msra.mxu2 %v4741_v14  ;;  %v2032_v57 = vsub.f32 %v4834_v20, %v5853_v44  ;;  %v4917_v44 = vsub.f32 %v304_v51, %v4895_v43  ;;  %v502_v51 = vsel %vm368_vm2, %v327_v34, 0 }
 0x225   : > { %1937 = vmatpush.xpose.msra.mxu0 %v4737_v49  ;;  %1986 = vmatpush.xpose.msra.mxu1 %v1985_v28  ;;  %v5852_v28 = vand.u32 4294901760, %v4840_v45  ;;  %v5866_v26 = vand.u32 4294901760, %v4917_v44 }
 0x226   : > { %2133 = vmatpush.xpose.msra.mxu3 %v4737_v49 }
 0x227   : > { %2084 = vmatpush.xpose.msra.mxu2 %v4755_v36 }
 0x229   : > { %1939 = vmatpush.xpose.msra.mxu0 %v4751_v18  ;;  %1992 = vmatpush.xpose.msra.mxu1 %v1991_v17  ;;  %v2027_v17 = vand.u32 4294901760, %v2026_v48  ;;  %v508_v48 = vsel %vm368_vm2, %v331_v37, 0 }
 0x22a   : > { %2135 = vmatpush.xpose.msra.mxu3 %v4751_v18  ;;  %v4906_v37 = vand.u32 4294901760, %v508_v48 }
 0x22b   : > { %2087 = vmatpush.xpose.msra.mxu2 %v4769_v3 }
 0x22d   : > { %1941 = vmatpush.xpose.msra.mxu0 %v4761_v38  ;;  %1998 = vmatpush.xpose.msra.mxu1 %v1997_v58  ;;  %v4863_v58 = vsub.f32 %v310_v9, %v4846_v11  ;;  %v4884_v9 = vand.u32 4294901760, %v511_v39 }
 0x22e   : > { %2137 = vmatpush.xpose.msra.mxu3 %v4761_v38 }
 0x22f   : > { %2090 = vmatpush.xpose.msra.mxu2 %v4775_v55  ;;  %v5851_v35 = vand.u32 4294901760, %v4863_v58 }
 0x231   : > { %1943 = vmatpush.xpose.msra.mxu0 %v4781_v25  ;;  %2004 = vmatpush.xpose.msra.mxu1 %v2003_v41  ;;  %v2038_v41 = vsub.f32 %v4840_v45, %v5852_v28 }
 0x232   : > { %2139 = vmatpush.xpose.msra.mxu3 %v4781_v25 }
 0x233   : > { %2093 = vmatpush.xpose.msra.mxu2 %v4795_v6  ;;  %v2039_v30 = vand.u32 4294901760, %v2038_v41  ;;  %v4904_v41 = vsub.f32 %v511_v39, %v4884_v9 }
 0x235   : > { %1945 = vmatpush.xpose.msra.mxu0 %v4792_v8  ;;  %2010 = vmatpush.xpose.msra.mxu1 %v2009_v59  ;;  %v2033_v59 = vand.u32 4294901760, %v2032_v57  ;;  %v4899_v57 = vsub.f32 %v306_v31, %v4876_v10  ;;  %v5864_v13 = vand.u32 4294901760, %v4904_v41 }
 0x236   : > { %2141 = vmatpush.xpose.msra.mxu3 %v4792_v8 }
 0x237   : > { %2096 = vmatpush.xpose.msra.mxu2 %v4808_v33  ;;  %v5861_v39 = vand.u32 4294901760, %v4899_v57 }
 0x239   : > { %1947 = vmatpush.xpose.msra.mxu0 %v4804_v61  ;;  %2016 = vmatpush.xpose.msra.mxu1 %v2015_v54  ;;  %v4880_v54 = vsub.f32 %v308_v4, %v4860_v63  ;;  %v2044_v4 = vsub.f32 %v4863_v58, %v5851_v35 }
 0x23a   : > { %2143 = vmatpush.xpose.msra.mxu3 %v4804_v61 }
 0x23b   : > { %2099 = vmatpush.xpose.msra.mxu2 %v4821_v46  ;;  %v2045_v28 = vand.u32 4294901760, %v2044_v4 }
 0x23d   : > { %1949 = vmatpush.xpose.msra.mxu0 %v4817_v19  ;;  %2022 = vmatpush.xpose.msra.mxu1 %v2021_v16  ;;  %v4888_v16 = vsub.f32 %v514_v5, %v4868_v27  ;;  %v329_v5 = vld [vmem:[%s3571_s21 + $0x2c8] sm:$0xff] }
 0x23e   : > { %2145 = vmatpush.xpose.msra.mxu3 %v4817_v19  ;;  %v505_v35 = vsel %vm368_vm2, %v329_v5, 0  ;;  %v4923_v5 = vsub.f32 %v508_v48, %v4906_v37  ;;  %v2056_v48 = vsub.f32 %v4899_v57, %v5861_v39  ;;  %v499_v39 = vsel %vm368_vm2, %v325_v22, 0 }
 0x23f   : > { %2102 = vmatpush.xpose.msra.mxu2 %v4834_v20  ;;  %v4929_v4 = vand.u32 4294901760, %v505_v35 }
 0x240   : > { %v5865_v1 = vand.u32 4294901760, %v4923_v5  ;;  %v2057_v32 = vand.u32 4294901760, %v2056_v48  ;;  %v4966_v48 = vand.u32 4294901760, %v499_v39 }
 0x241   : > { %1951 = vmatpush.xpose.msra.mxu0 %v4826_v29  ;;  %2028 = vmatpush.xpose.msra.mxu1 %v2027_v17  ;;  %v5856_v17 = vand.u32 4294901760, %v4880_v54 }
 0x242   : > { %2147 = vmatpush.xpose.msra.mxu3 %v4826_v29  ;;  %v2325_v22 = vsub.f32 %v4923_v5, %v5865_v1 }
 0x243   : > { %2105 = vmatpush.xpose.msra.mxu2 %v4840_v45  ;;  %v2050_v31 = vsub.f32 %v4880_v54, %v5856_v17 }
 0x245   : > { %1953 = vmatpush.xpose.msra.mxu0 %v4846_v11  ;;  %2034 = vmatpush.xpose.msra.mxu1 %v2033_v59  ;;  %v5859_v59 = vand.u32 4294901760, %v4888_v16  ;;  %v2051_v17 = vand.u32 4294901760, %v2050_v31  ;;  %v4947_v31 = vand.u32 4294901760, %v502_v51 }
 0x246   : > { %2149 = vmatpush.xpose.msra.mxu3 %v4846_v11 }
 0x247   : > { %2108 = vmatpush.xpose.msra.mxu2 %v4863_v58 }
 0x249   : > { %1955 = vmatpush.xpose.msra.mxu0 %v4860_v63  ;;  %2040 = vmatpush.xpose.msra.mxu1 %v2039_v30  ;;  %v2313_v30 = vsub.f32 %v4888_v16, %v5859_v59  ;;  %v2319_v59 = vsub.f32 %v4904_v41, %v5864_v13  ;;  %v2062_v13 = vsub.f32 %v4917_v44, %v5866_v26  ;;  %v5948_v26 = vld [vmem:[#allocation8_spill] sm:$0xff] }
 0x24a   : > { %2151 = vmatpush.xpose.msra.mxu3 %v4860_v63 }
 0x24b   : > { %2111 = vmatpush.xpose.msra.mxu2 %v4880_v54  ;;  %v2314_v34 = vand.u32 4294901760, %v2313_v30  ;;  %v4964_v30 = vsub.f32 %v502_v51, %v4947_v31  ;;  %v2063_v1 = vand.u32 4294901760, %v2062_v13  ;;  %v4975_v51 = vand.u32 4294901760, %v496_v62 }
 0x24d   : > { %1957 = vmatpush.xpose.msra.mxu0 %v4876_v10  ;;  %2046 = vmatpush.xpose.msra.mxu1 %v2045_v28  ;;  %v4945_v28 = vsub.f32 %v505_v35, %v4929_v4  ;;  %v2320_v35 = vand.u32 4294901760, %v2319_v59  ;;  %v5947_v59 = vld [vmem:[#allocation9_spill] sm:$0xff]  ;;  %v5868_v53 = vand.u32 4294901760, %v4964_v30 }
 0x24e   : > { %2153 = vmatpush.xpose.msra.mxu3 %v4876_v10 }
 0x24f   : > { %2114 = vmatpush.xpose.msra.mxu2 %v4899_v57 }
 0x251   : > { %1959 = vmatpush.xpose.msra.mxu0 %v4895_v43  ;;  %2052 = vmatpush.xpose.msra.mxu1 %v2051_v17  ;;  %v5870_v17 = vand.u32 4294901760, %v4945_v28 }
 0x252   : > { %2155 = vmatpush.xpose.msra.mxu3 %v4895_v43 }
 0x253   : > { %2117 = vmatpush.xpose.msra.mxu2 %v4917_v44  ;;  %v2331_v12 = vsub.f32 %v4945_v28, %v5870_v17 }
 0x254   : > { %1965 = vmatmul.f32.vlgmr.msra.gmra.mxu0 %v5947_v59 }
 0x255   : > { %2166 = vmatpush.xpose.msrb.mxu0 %v1971_v56  ;;  %v321_v56 = vld [vmem:[%s3571_s21 + $0x288] sm:$0xff]  ;;  %2058 = vmatpush.xpose.msra.mxu1 %v2057_v32  ;;  %v4983_v32 = vsub.f32 %v499_v39, %v4966_v48  ;;  %v2332_v39 = vand.u32 4294901760, %v2331_v12 }
 0x256   : > { %2315 = vmatpush.xpose.msrb.mxu3 %v2314_v34  ;;  %v2326_v34 = vand.u32 4294901760, %v2325_v22  ;;  %2120 = vmatmul.f32.vlgmr.msra.gmra.mxu2 %v5949_v52  ;;  %v493_v13 = vsel %vm368_vm2, %v321_v56, 0  ;;  %v2337_v56 = vsub.f32 %v4964_v30, %v5868_v53 }
 0x257   : > { %2270 = vmatpush.xpose.msrb.mxu2 %v4868_v27  ;;  %2159 = vmatmul.f32.vlgmr.msra.gmra.mxu3 %v5948_v26  ;;  %v4994_v22 = vand.u32 4294901760, %v493_v13 }
 0x259   : > { %2170 = vmatpush.xpose.msrb.mxu0 %v1977_v7  ;;  %2064 = vmatpush.xpose.msra.mxu1 %v2063_v1  ;;  %v5950_v7 = vand.u32 4294901760, %v4722_v21  ;;  %v5869_v1 = vand.u32 4294901760, %v4983_v32  ;;  %v490_v21 = vsel %vm368_vm2, %v319_v0, 0  ;;  %v5009_v12 = vsub.f32 %v493_v13, %v4994_v22 }
 0x25a   : > { %2321 = vmatpush.xpose.msrb.mxu3 %v2320_v35  ;;  %v4992_v35 = vsub.f32 %v496_v62, %v4975_v51  ;;  %v5951_v62 = vand.u32 4294901760, %v4741_v14  ;;  %v5014_v53 = vand.u32 4294901760, %v490_v21 }
 0x25b   : > { %2272 = vmatpush.xpose.msrb.mxu2 %v4884_v9  ;;  %v2343_v0 = vsub.f32 %v4983_v32, %v5869_v1 }
 0x25c   : > { %2066 = vmatmul.f32.vlgmr.msra.gmra.mxu1 %v3914_v24  ;;  %v5027_v1 = vsub.f32 %v490_v21, %v5014_v53 }
 0x25d   : > { %2174 = vmatpush.xpose.msrb.mxu0 %v5950_v7  ;;  %2233 = vmatpush.xpose.msrb.mxu1 %v4683_v60  ;;  %v317_v60 = vld [vmem:[%s3571_s21 + $0x268] sm:$0xff]  ;;  %v2338_v7 = vand.u32 4294901760, %v2337_v56  ;;  %v2344_v56 = vand.u32 4294901760, %v2343_v0 }
 0x25e   : > { %2327 = vmatpush.xpose.msrb.mxu3 %v2326_v34  ;;  %v5871_v34 = vand.u32 4294901760, %v4992_v35  ;;  %v487_v14 = vsel %vm368_vm2, %v317_v60, 0  ;;  %v313_v60 = vld [vmem:[%s3571_s21 + $0x248] sm:$0xff]  ;;  %v5872_v21 = vand.u32 4294901760, %v5027_v1 }
 0x25f   : > { %2274 = vmatpush.xpose.msrb.mxu2 %v4906_v37  ;;  %v5029_v17 = vand.u32 4294901760, %v487_v14 }
 0x260   : > { %v2349_v13 = vsub.f32 %v4992_v35, %v5871_v34 }
 0x261   : > { %2178 = vmatpush.xpose.msrb.mxu0 %v5951_v62  ;;  %2235 = vmatpush.xpose.msrb.mxu1 %v4690_v23  ;;  %v315_v62 = vld [vmem:[%s3571_s21 + $0x258] sm:$0xff]  ;;  %v5952_v23 = vand.u32 4294901760, %v4755_v36  ;;  %v5042_v0 = vsub.f32 %v487_v14, %v5029_v17  ;;  %v2361_v14 = vsub.f32 %v5027_v1, %v5872_v21 }
 0x262   : > { %2333 = vmatpush.xpose.msrb.mxu3 %v2332_v39  ;;  %v5873_v39 = vand.u32 4294901760, %v5009_v12  ;;  %v484_v36 = vsel %vm368_vm2, %v315_v62, 0  ;;  %v481_v62 = vsel %vm368_vm2, %v313_v60, 0 }
 0x263   : > { %2276 = vmatpush.xpose.msrb.mxu2 %v4929_v4  ;;  %v5044_v34 = vand.u32 4294901760, %v484_v36 }
 0x265   : > { %2182 = vmatpush.xpose.msrb.mxu0 %v5952_v23  ;;  %2237 = vmatpush.xpose.msrb.mxu1 %v4705_v47  ;;  %v5953_v47 = vand.u32 4294901760, %v4769_v3  ;;  %v2350_v23 = vand.u32 4294901760, %v2349_v13  ;;  %v311_v3 = vld [vmem:[%s3571_s21 + $0x238] sm:$0xff]  ;;  %v5052_v13 = vand.u32 4294901760, %v481_v62  ;;  %v5059_v60 = vsub.f32 %v484_v36, %v5044_v34 }
 0x266   : > { %2339 = vmatpush.xpose.msrb.mxu3 %v2338_v7  ;;  %v2355_v7 = vsub.f32 %v5009_v12, %v5873_v39 }
 0x267   : > { %2278 = vmatpush.xpose.msrb.mxu2 %v4947_v31  ;;  %v5875_v21 = vand.u32 4294901760, %v5059_v60 }
 0x269   : > { %2186 = vmatpush.xpose.msrb.mxu0 %v5953_v47  ;;  %2239 = vmatpush.xpose.msrb.mxu1 %v4719_v42  ;;  %v5954_v42 = vand.u32 4294901760, %v4775_v55  ;;  %v5874_v47 = vand.u32 4294901760, %v5042_v0  ;;  %v478_v55 = vsel %vm368_vm2, %v311_v3, 0  ;;  %v307_v3 = vld [vmem:[%s3571_s21 + $0x218] sm:$0xff] }
 0x26a   : > { %2345 = vmatpush.xpose.msrb.mxu3 %v2344_v56  ;;  %v2356_v56 = vand.u32 4294901760, %v2355_v7  ;;  %v2362_v7 = vand.u32 4294901760, %v2361_v14  ;;  %v5074_v39 = vand.u32 4294901760, %v478_v55  ;;  %v2373_v14 = vsub.f32 %v5059_v60, %v5875_v21 }
 0x26b   : > { %2280 = vmatpush.xpose.msrb.mxu2 %v4966_v48  ;;  %v2367_v36 = vsub.f32 %v5042_v0, %v5874_v47 }
 0x26d   : > { %2190 = vmatpush.xpose.msrb.mxu0 %v5954_v42  ;;  %2241 = vmatpush.xpose.msrb.mxu1 %v4737_v49  ;;  %v309_v42 = vld [vmem:[%s3571_s21 + $0x228] sm:$0xff]  ;;  %v5955_v49 = vand.u32 4294901760, %v4795_v6 }
 0x26e   : > { %2351 = vmatpush.xpose.msrb.mxu3 %v2350_v23  ;;  %v5068_v23 = vsub.f32 %v481_v62, %v5052_v13  ;;  %v475_v6 = vsel %vm368_vm2, %v309_v42, 0  ;;  %v305_v42 = vld [vmem:[%s3571_s21 + $0x208] sm:$0xff] }
 0x26f   : > { %2282 = vmatpush.xpose.msrb.mxu2 %v4975_v51  ;;  %v5089_v47 = vand.u32 4294901760, %v475_v6 }
 0x270   : > { %v2378_v62 = vand.u32 4294901760, %v5068_v23 }
 0x271   : > { %2194 = vmatpush.xpose.msrb.mxu0 %v5955_v49  ;;  %2243 = vmatpush.xpose.msrb.mxu1 %v4751_v18  ;;  %v5956_v18 = vand.u32 4294901760, %v4808_v33  ;;  %v5087_v49 = vsub.f32 %v478_v55, %v5074_v39  ;;  %v472_v33 = vsel %vm368_vm2, %v307_v3, 0  ;;  %v5958_v3 = vand.u32 4294901760, %v4834_v20 }
 0x272   : > { %2357 = vmatpush.xpose.msrb.mxu3 %v2356_v56  ;;  %v2368_v56 = vand.u32 4294901760, %v2367_v36  ;;  %v2374_v36 = vand.u32 4294901760, %v2373_v14  ;;  %v5104_v21 = vand.u32 4294901760, %v472_v33  ;;  %v5959_v20 = vand.u32 4294901760, %v4840_v45 }
 0x273   : > { %2284 = vmatpush.xpose.msrb.mxu2 %v4994_v22  ;;  %v2384_v55 = vand.u32 4294901760, %v5087_v49 }
 0x274   : > { %v5116_v14 = vsub.f32 %v472_v33, %v5104_v21 }
 0x275   : > { %2198 = vmatpush.xpose.msrb.mxu0 %v5956_v18  ;;  %2245 = vmatpush.xpose.msrb.mxu1 %v4761_v38  ;;  %v5957_v38 = vand.u32 4294901760, %v4821_v46  ;;  %v5102_v18 = vsub.f32 %v475_v6, %v5089_v47  ;;  %v469_v46 = vsel %vm368_vm2, %v305_v42, 0 }
 0x276   : > { %2363 = vmatpush.xpose.msrb.mxu3 %v2362_v7  ;;  %v2379_v7 = vsub.f32 %v5068_v23, %v2378_v62 }
 0x277   : > { %2286 = vmatpush.xpose.msrb.mxu2 %v5014_v53  ;;  %v2390_v6 = vand.u32 4294901760, %v5102_v18 }
 0x279   : > { %2202 = vmatpush.xpose.msrb.mxu0 %v5957_v38  ;;  %2247 = vmatpush.xpose.msrb.mxu1 %v4781_v25  ;;  %v2380_v25 = vand.u32 4294901760, %v2379_v7  ;;  %v5118_v38 = vand.u32 4294901760, %v469_v46  ;;  %v2391_v42 = vsub.f32 %v5102_v18, %v2390_v6  ;;  %v2396_v7 = vand.u32 4294901760, %v5116_v14 }
 0x27a   : > { %2369 = vmatpush.xpose.msrb.mxu3 %v2368_v56  ;;  %v2385_v56 = vsub.f32 %v5087_v49, %v2384_v55 }
 0x27b   : > { %2288 = vmatpush.xpose.msrb.mxu2 %v5029_v17  ;;  %v5129_v33 = vsub.f32 %v469_v46, %v5118_v38  ;;  %v2397_v45 = vsub.f32 %v5116_v14, %v2396_v7  ;;  %v5961_v46 = vand.u32 4294901760, %v4880_v54  ;;  %v5963_v54 = vand.u32 4294901760, %v4917_v44 }
 0x27c   : > { %v5966_v44 = vand.u32 4294901760, %v4923_v5 }
 0x27d   : > { %2206 = vmatpush.xpose.msrb.mxu0 %v5958_v3  ;;  %2249 = vmatpush.xpose.msrb.mxu1 %v4792_v8  ;;  %v2386_v8 = vand.u32 4294901760, %v2385_v56  ;;  %v2402_v3 = vand.u32 4294901760, %v5129_v33 }
 0x27e   : > { %2375 = vmatpush.xpose.msrb.mxu3 %v2374_v36  ;;  %v5960_v36 = vand.u32 4294901760, %v4863_v58  ;;  %v2398_v58 = vand.u32 4294901760, %v2397_v45 }
 0x27f   : > { %2290 = vmatpush.xpose.msrb.mxu2 %v5044_v34 }
 0x281   : > { %2210 = vmatpush.xpose.msrb.mxu0 %v5959_v20  ;;  %2251 = vmatpush.xpose.msrb.mxu1 %v4804_v61  ;;  %v2392_v61 = vand.u32 4294901760, %v2391_v42  ;;  %v352_v42 = vld [vmem:[%s3571_s21 + $0x380] sm:$0xff] }
 0x282   : > { %2381 = vmatpush.xpose.msrb.mxu3 %v2380_v25  ;;  %v5962_v25 = vand.u32 4294901760, %v4899_v57  ;;  %v5973_v57 = vand.u32 4294901760, %v5042_v0 }
 0x283   : > { %2292 = vmatpush.xpose.msrb.mxu2 %v5052_v13 }
 0x285   : > { %2214 = vmatpush.xpose.msrb.mxu0 %v5960_v36  ;;  %2253 = vmatpush.xpose.msrb.mxu1 %v4817_v19  ;;  %v2403_v19 = vsub.f32 %v5129_v33, %v2402_v3 }
 0x286   : > { %2387 = vmatpush.xpose.msrb.mxu3 %v2386_v8 }
 0x287   : > { %2294 = vmatpush.xpose.msrb.mxu2 %v5074_v39  ;;  %v2404_v56 = vand.u32 4294901760, %v2403_v19 }
 0x289   : > { %2218 = vmatpush.xpose.msrb.mxu0 %v5961_v46  ;;  %2255 = vmatpush.xpose.msrb.mxu1 %v4826_v29  ;;  %v5964_v29 = vand.u32 4294901760, %v4888_v16 }
 0x28a   : > { %2393 = vmatpush.xpose.msrb.mxu3 %v2392_v61  ;;  %v5321_v61 = vand.u32 4294901760, %v352_v42 }
 0x28b   : > { %2296 = vmatpush.xpose.msrb.mxu2 %v5089_v47 }
 0x28d   : > { %2222 = vmatpush.xpose.msrb.mxu0 %v5962_v25  ;;  %2257 = vmatpush.xpose.msrb.mxu1 %v4846_v11  ;;  %v5965_v11 = vand.u32 4294901760, %v4904_v41 }
 0x28e   : > { %2399 = vmatpush.xpose.msrb.mxu3 %v2398_v58 }
 0x28f   : > { %2298 = vmatpush.xpose.msrb.mxu2 %v5104_v21 }
 0x291   : > { %2226 = vmatpush.xpose.msrb.mxu0 %v5963_v54  ;;  %2259 = vmatpush.xpose.msrb.mxu1 %v4860_v63  ;;  %v5967_v63 = vand.u32 4294901760, %v4945_v28  ;;  %v348_v54 = vld [vmem:[%s3571_s21 + $0x360] sm:$0xff] }
 0x292   : > { %2405 = vmatpush.xpose.msrb.mxu3 %v2404_v56  ;;  %v5335_v56 = vsub.f32 %v352_v42, %v5321_v61 }
 0x293   : > { %2300 = vmatpush.xpose.msrb.mxu2 %v5118_v38 }
 0x294   : > { %2228 = vmatmul.f32.vlgmr.msrb.gmra.mxu0 %v3914_v24 }
 0x295   : > { %2413 = vmatpush.xpose.msra.mxu0 %v4888_v16  ;;  %2261 = vmatpush.xpose.msrb.mxu1 %v4876_v10  ;;  %v5969_v10 = vand.u32 4294901760, %v4983_v32  ;;  %v5971_v16 = vand.u32 4294901760, %v5009_v12 }
 0x296   : > { %2574 = vmatpush.xpose.msra.mxu3 %v4868_v27  ;;  %2306 = vmatmul.f32.vlgmr.msrb.gmra.mxu2 %v4065_v40 }
 0x297   : > { %2507 = vmatpush.xpose.msra.mxu2 %v5964_v29  ;;  %2407 = vmatmul.f32.vlgmr.msrb.gmra.mxu3 %v4031_v15 }
 0x299   : > { %2416 = vmatpush.xpose.msra.mxu0 %v4904_v41  ;;  %2263 = vmatpush.xpose.msrb.mxu1 %v4895_v43  ;;  %v5972_v43 = vand.u32 4294901760, %v5027_v1  ;;  %v5974_v41 = vand.u32 4294901760, %v5059_v60 }
 0x29a   : > { %2576 = vmatpush.xpose.msra.mxu3 %v4884_v9 }
 0x29b   : > { %2511 = vmatpush.xpose.msra.mxu2 %v5965_v11 }
 0x29c   : > { %2265 = vmatmul.f32.vlgmr.msrb.gmra.mxu1 %v3914_v24 }
 0x29d   : > { %2419 = vmatpush.xpose.msra.mxu0 %v4923_v5  ;;  %2466 = vmatpush.xpose.msra.mxu1 %v4868_v27  ;;  %v5968_v27 = vand.u32 4294901760, %v4964_v30  ;;  %v364_v5 = vld [vmem:[%s3571_s21 + $0x3e0] sm:$0xff] }
 0x29e   : > { %2578 = vmatpush.xpose.msra.mxu3 %v4906_v37 }
 0x29f   : > { %2515 = vmatpush.xpose.msra.mxu2 %v5966_v44  ;;  %v5344_v44 = vand.u32 4294901760, %v348_v54 }
 0x2a1   : > { %2422 = vmatpush.xpose.msra.mxu0 %v4945_v28  ;;  %2468 = vmatpush.xpose.msra.mxu1 %v4884_v9  ;;  %v5970_v9 = vand.u32 4294901760, %v4992_v35 }
 0x2a2   : > { %2580 = vmatpush.xpose.msra.mxu3 %v4929_v4 }
 0x2a3   : > { %2519 = vmatpush.xpose.msra.mxu2 %v5967_v63  ;;  %v5881_v63 = vand.u32 4294901760, %v5335_v56 }
 0x2a5   : > { %2425 = vmatpush.xpose.msra.mxu0 %v4964_v30  ;;  %2470 = vmatpush.xpose.msra.mxu1 %v4906_v37  ;;  %v366_v37 = vld [vmem:[%s3571_s21 + $0x3f0] sm:$0xff] }
 0x2a6   : > { %2582 = vmatpush.xpose.msra.mxu3 %v4947_v31 }
 0x2a7   : > { %2523 = vmatpush.xpose.msra.mxu2 %v5968_v27 }
 0x2a9   : > { %2428 = vmatpush.xpose.msra.mxu0 %v4983_v32  ;;  %2472 = vmatpush.xpose.msra.mxu1 %v4929_v4  ;;  %v5230_v4 = vand.u32 4294901760, %v364_v5 }
 0x2aa   : > { %2584 = vmatpush.xpose.msra.mxu3 %v4966_v48 }
 0x2ab   : > { %2527 = vmatpush.xpose.msra.mxu2 %v5969_v10  ;;  %v346_v10 = vld [vmem:[%s3571_s21 + $0x350] sm:$0xff] }
 0x2ad   : > { %2431 = vmatpush.xpose.msra.mxu0 %v4992_v35  ;;  %2474 = vmatpush.xpose.msra.mxu1 %v4947_v31  ;;  %v362_v31 = vld [vmem:[%s3571_s21 + $0x3d0] sm:$0xff] }
 0x2ae   : > { %2586 = vmatpush.xpose.msra.mxu3 %v4975_v51  ;;  %v5245_v30 = vand.u32 4294901760, %v362_v31 }
 0x2af   : > { %2531 = vmatpush.xpose.msra.mxu2 %v5970_v9 }
 0x2b1   : > { %2434 = vmatpush.xpose.msra.mxu0 %v5009_v12  ;;  %2476 = vmatpush.xpose.msra.mxu1 %v4966_v48 }
 0x2b2   : > { %2588 = vmatpush.xpose.msra.mxu3 %v4994_v22 }
 0x2b3   : > { %2535 = vmatpush.xpose.msra.mxu2 %v5971_v16  ;;  %v2696_v16 = vsub.f32 %v5335_v56, %v5881_v63  ;;  %v359_v63 = vld [vmem:[%s3571_s21 + $0x3b8] sm:$0xff] }
 0x2b5   : > { %2437 = vmatpush.xpose.msra.mxu0 %v5027_v1  ;;  %2478 = vmatpush.xpose.msra.mxu1 %v4975_v51  ;;  %v360_v51 = vld [vmem:[%s3571_s21 + $0x3c0] sm:$0xff]  ;;  %v5262_v1 = vsub.f32 %v362_v31, %v5245_v30  ;;  %v2697_v31 = vand.u32 4294901760, %v2696_v16  ;;  %v363_v16 = vld [vmem:[%s3571_s21 + $0x3d8] sm:$0xff] }
 0x2b6   : > { %2590 = vmatpush.xpose.msra.mxu3 %v5014_v53 }
 0x2b7   : > { %2539 = vmatpush.xpose.msra.mxu2 %v5972_v43  ;;  %v5357_v43 = vand.u32 4294901760, %v346_v10 }
 0x2b9   : > { %2440 = vmatpush.xpose.msra.mxu0 %v5042_v0  ;;  %2480 = vmatpush.xpose.msra.mxu1 %v4994_v22  ;;  %v5259_v22 = vand.u32 4294901760, %v360_v51 }
 0x2ba   : > { %2592 = vmatpush.xpose.msra.mxu3 %v5029_v17 }
 0x2bb   : > { %2543 = vmatpush.xpose.msra.mxu2 %v5973_v57 }
 0x2bd   : > { %2443 = vmatpush.xpose.msra.mxu0 %v5059_v60  ;;  %2482 = vmatpush.xpose.msra.mxu1 %v5014_v53  ;;  %v5223_v53 = vand.u32 4294901760, %v366_v37 }
 0x2be   : > { %2594 = vmatpush.xpose.msra.mxu3 %v5044_v34 }
 0x2bf   : > { %2547 = vmatpush.xpose.msra.mxu2 %v5974_v41  ;;  %v5234_v28 = vsub.f32 %v366_v37, %v5223_v53  ;;  %v5361_v41 = vsub.f32 %v348_v54, %v5344_v44  ;;  %v344_v37 = vld [vmem:[%s3571_s21 + $0x340] sm:$0xff] }
 0x2c1   : > { %2446 = vmatpush.xpose.msra.mxu0 %v5068_v23  ;;  %2484 = vmatpush.xpose.msra.mxu1 %v5029_v17  ;;  %v5242_v17 = vsub.f32 %v364_v5, %v5230_v4  ;;  %v2653_v48 = vand.u32 4294901760, %v5234_v28  ;;  %v5366_v5 = vand.u32 4294901760, %v344_v37 }
 0x2c2   : > { %2596 = vmatpush.xpose.msra.mxu3 %v5052_v13 }
 0x2c3   : > { %2551 = vmatpush.xpose.msra.mxu2 %v2378_v62  ;;  %v5890_v32 = vand.u32 4294901760, %v5242_v17  ;;  %v2654_v35 = vsub.f32 %v5234_v28, %v2653_v48 }
 0x2c5   : > { %2449 = vmatpush.xpose.msra.mxu0 %v5087_v49  ;;  %2486 = vmatpush.xpose.msra.mxu1 %v5044_v34  ;;  %v358_v34 = vld [vmem:[%s3571_s21 + $0x3b0] sm:$0xff]  ;;  %v2660_v12 = vsub.f32 %v5242_v17, %v5890_v32 }
 0x2c6   : > { %2598 = vmatpush.xpose.msra.mxu3 %v5074_v39  ;;  %v5277_v0 = vand.u32 4294901760, %v358_v34 }
 0x2c7   : > { %2555 = vmatpush.xpose.msra.mxu2 %v2384_v55  ;;  %v2661_v60 = vand.u32 4294901760, %v2660_v12  ;;  %v342_v12 = vld [vmem:[%s3571_s21 + $0x330] sm:$0xff] }
 0x2c8   : > { %v5295_v55 = vsub.f32 %v358_v34, %v5277_v0  ;;  %v5374_v34 = vsub.f32 %v346_v10, %v5357_v43 }
 0x2c9   : > { %2452 = vmatpush.xpose.msra.mxu0 %v5102_v18  ;;  %2488 = vmatpush.xpose.msra.mxu1 %v5052_v13  ;;  %v5889_v13 = vand.u32 4294901760, %v5262_v1  ;;  %v354_v18 = vld [vmem:[%s3571_s21 + $0x390] sm:$0xff] }
 0x2ca   : > { %2600 = vmatpush.xpose.msra.mxu3 %v5089_v47  ;;  %v5885_v20 = vand.u32 4294901760, %v5295_v55 }
 0x2cb   : > { %2559 = vmatpush.xpose.msra.mxu2 %v2390_v6  ;;  %v2666_v23 = vsub.f32 %v5262_v1, %v5889_v13  ;;  %v5301_v6 = vand.u32 4294901760, %v354_v18  ;;  %v355_v13 = vld [vmem:[%s3571_s21 + $0x398] sm:$0xff] }
 0x2cc   : > { %v2678_v36 = vsub.f32 %v5295_v55, %v5885_v20  ;;  %v357_v20 = vld [vmem:[%s3571_s21 + $0x3a8] sm:$0xff] }
 0x2cd   : > { %2455 = vmatpush.xpose.msra.mxu0 %v5116_v14  ;;  %2490 = vmatpush.xpose.msra.mxu1 %v5074_v39  ;;  %v2655_v39 = vand.u32 4294901760, %v2654_v35  ;;  %v2667_v14 = vand.u32 4294901760, %v2666_v23  ;;  %v5879_v35 = vand.u32 4294901760, %v5361_v41  ;;  %v5386_v23 = vand.u32 4294901760, %v342_v12 }
 0x2ce   : > { %2602 = vmatpush.xpose.msra.mxu3 %v5104_v21  ;;  %v2679_v58 = vand.u32 4294901760, %v2678_v36  ;;  %v365_v36 = vld [vmem:[%s3571_s21 + $0x3e8] sm:$0xff] }
 0x2cf   : > { %2563 = vmatpush.xpose.msra.mxu2 %v2396_v7  ;;  %v5315_v7 = vsub.f32 %v354_v18, %v5301_v6  ;;  %v5877_v18 = vand.u32 4294901760, %v5374_v34  ;;  %v5403_v54 = vsub.f32 %v342_v12, %v5386_v23  ;;  %v559_v10 = vsel %vm368_vm2, %v365_v36, 0 }
 0x2d0   : > { %v556_v36 = vsel %vm368_vm2, %v363_v16, 0 }
 0x2d1   : > { %2458 = vmatpush.xpose.msra.mxu0 %v5129_v33  ;;  %2492 = vmatpush.xpose.msra.mxu1 %v5089_v47  ;;  %v5281_v47 = vsub.f32 %v360_v51, %v5259_v22  ;;  %v5882_v46 = vand.u32 4294901760, %v5315_v7  ;;  %v5446_v16 = vand.u32 4294901760, %v556_v36 }
 0x2d2   : > { %2604 = vmatpush.xpose.msra.mxu3 %v5118_v38 }
 0x2d3   : > { %2567 = vmatpush.xpose.msra.mxu2 %v2402_v3  ;;  %v5887_v49 = vand.u32 4294901760, %v5281_v47  ;;  %v350_v3 = vld [vmem:[%s3571_s21 + $0x370] sm:$0xff]  ;;  %v2690_v29 = vsub.f32 %v5315_v7, %v5882_v46 }
 0x2d4   : > { %2461 = vmatmul.f32.vlgmr.msra.gmra.mxu0 %v4042_v2  ;;  %v5332_v25 = vand.u32 4294901760, %v350_v3 }
 0x2d5   : > { %2611 = vmatpush.xpose.msrb.mxu0 %v5223_v53  ;;  %2494 = vmatpush.xpose.msra.mxu1 %v5104_v21  ;;  %v356_v21 = vld [vmem:[%s3571_s21 + $0x3a0] sm:$0xff]  ;;  %v2691_v9 = vand.u32 4294901760, %v2690_v29  ;;  %v338_v29 = vld [vmem:[%s3571_s21 + $0x310] sm:$0xff] }
 0x2d6   : > { %2807 = vmatpush.xpose.msrb.mxu3 %v5223_v53  ;;  %2569 = vmatmul.f32.vlgmr.msra.gmra.mxu2 %v4031_v15  ;;  %v5291_v62 = vand.u32 4294901760, %v356_v21  ;;  %v5348_v27 = vsub.f32 %v350_v3, %v5332_v25 }
 0x2d7   : > { %2754 = vmatpush.xpose.msrb.mxu2 %v5234_v28  ;;  %2606 = vmatmul.f32.vlgmr.msra.gmra.mxu3 %v4031_v15  ;;  %v544_v28 = vsel %vm368_vm2, %v355_v13, 0 }
 0x2d8   : > { %v5309_v8 = vsub.f32 %v356_v21, %v5291_v62  ;;  %v5880_v57 = vand.u32 4294901760, %v5348_v27 }
 0x2d9   : > { %2613 = vmatpush.xpose.msrb.mxu0 %v5230_v4  ;;  %2496 = vmatpush.xpose.msra.mxu1 %v5118_v38  ;;  %v2672_v38 = vsub.f32 %v5281_v47, %v5887_v49 }
 0x2da   : > { %2809 = vmatpush.xpose.msrb.mxu3 %v5230_v4  ;;  %v5884_v45 = vand.u32 4294901760, %v5309_v8  ;;  %v2702_v51 = vsub.f32 %v5348_v27, %v5880_v57 }
 0x2db   : > { %2757 = vmatpush.xpose.msrb.mxu2 %v5242_v17  ;;  %v2673_v33 = vand.u32 4294901760, %v2672_v38  ;;  %v340_v38 = vld [vmem:[%s3571_s21 + $0x320] sm:$0xff] }
 0x2dc   : > { %2500 = vmatmul.f32.vlgmr.msra.gmra.mxu1 %v5946_v50  ;;  %v2684_v19 = vsub.f32 %v5309_v8, %v5884_v45  ;;  %v2703_v21 = vand.u32 4294901760, %v2702_v51  ;;  %v5878_v51 = vand.u32 4294901760, %v5403_v54 }
 0x2dd   : > { %2615 = vmatpush.xpose.msrb.mxu0 %v5245_v30  ;;  %2656 = vmatpush.xpose.msrb.mxu1 %v2655_v39  ;;  %v5380_v39 = vsub.f32 %v344_v37, %v5366_v5 }
 0x2de   : > { %2811 = vmatpush.xpose.msrb.mxu3 %v5245_v30  ;;  %v2685_v11 = vand.u32 4294901760, %v2684_v19  ;;  %v5400_v19 = vand.u32 4294901760, %v340_v38 }
 0x2df   : > { %2760 = vmatpush.xpose.msrb.mxu2 %v5262_v1  ;;  %v5876_v42 = vand.u32 4294901760, %v5380_v39 }
 0x2e0   : > { %v5420_v12 = vsub.f32 %v340_v38, %v5400_v19  ;;  %v2726_v38 = vsub.f32 %v5403_v54, %v5878_v51 }
 0x2e1   : > { %2617 = vmatpush.xpose.msrb.mxu0 %v5259_v22  ;;  %2662 = vmatpush.xpose.msrb.mxu1 %v2661_v60  ;;  %v2708_v60 = vsub.f32 %v5361_v41, %v5879_v35 }
 0x2e2   : > { %2813 = vmatpush.xpose.msrb.mxu3 %v5259_v22  ;;  %v2727_v35 = vand.u32 4294901760, %v2726_v38 }
 0x2e3   : > { %2763 = vmatpush.xpose.msrb.mxu2 %v5281_v47  ;;  %v2709_v3 = vand.u32 4294901760, %v2708_v60  ;;  %v5424_v60 = vand.u32 4294901760, %v559_v10 }
 0x2e5   : > { %2619 = vmatpush.xpose.msrb.mxu0 %v5277_v0  ;;  %2668 = vmatpush.xpose.msrb.mxu1 %v2667_v14  ;;  %v367_v14 = vld [vmem:[%s3571_s21 + $0x3f8] sm:$0xff] }
 0x2e6   : > { %2815 = vmatpush.xpose.msrb.mxu3 %v5277_v0 }
 0x2e7   : > { %2766 = vmatpush.xpose.msrb.mxu2 %v5295_v55 }
 0x2e9   : > { %2621 = vmatpush.xpose.msrb.mxu0 %v5291_v62  ;;  %2674 = vmatpush.xpose.msrb.mxu1 %v2673_v33  ;;  %v562_v33 = vsel %vm368_vm2, %v367_v14, 0 }
 0x2ea   : > { %2817 = vmatpush.xpose.msrb.mxu3 %v5291_v62 }
 0x2eb   : > { %2769 = vmatpush.xpose.msrb.mxu2 %v5309_v8 }
 0x2ed   : > { %2623 = vmatpush.xpose.msrb.mxu0 %v5301_v6  ;;  %2680 = vmatpush.xpose.msrb.mxu1 %v2679_v58  ;;  %v2714_v58 = vsub.f32 %v5374_v34, %v5877_v18 }
 0x2ee   : > { %2819 = vmatpush.xpose.msrb.mxu3 %v5301_v6 }
 0x2ef   : > { %2772 = vmatpush.xpose.msrb.mxu2 %v5315_v7  ;;  %v2715_v37 = vand.u32 4294901760, %v2714_v58 }
 0x2f1   : > { %2625 = vmatpush.xpose.msrb.mxu0 %v5321_v61  ;;  %2686 = vmatpush.xpose.msrb.mxu1 %v2685_v11  ;;  %v5408_v11 = vand.u32 4294901760, %v562_v33 }
 0x2f2   : > { %2821 = vmatpush.xpose.msrb.mxu3 %v5321_v61 }
 0x2f3   : > { %2775 = vmatpush.xpose.msrb.mxu2 %v5335_v56  ;;  %v5428_v14 = vsub.f32 %v562_v33, %v5408_v11  ;;  %v361_v33 = vld [vmem:[%s3571_s21 + $0x3c8] sm:$0xff] }
 0x2f4   : > { %v553_v51 = vsel %vm368_vm2, %v361_v33, 0  ;;  %v5463_v33 = vsub.f32 %v556_v36, %v5446_v16 }
 0x2f5   : > { %2627 = vmatpush.xpose.msrb.mxu0 %v5332_v25  ;;  %2692 = vmatpush.xpose.msrb.mxu1 %v2691_v9  ;;  %v2720_v9 = vsub.f32 %v5380_v39, %v5876_v42  ;;  %v5883_v42 = vand.u32 4294901760, %v5420_v12  ;;  %v5469_v38 = vand.u32 4294901760, %v553_v51 }
 0x2f6   : > { %2823 = vmatpush.xpose.msrb.mxu3 %v5332_v25  ;;  %v5892_v49 = vand.u32 4294901760, %v5463_v33 }
 0x2f7   : > { %2778 = vmatpush.xpose.msrb.mxu2 %v5348_v27 }
 0x2f9   : > { %2629 = vmatpush.xpose.msrb.mxu0 %v5344_v44  ;;  %2698 = vmatpush.xpose.msrb.mxu1 %v2697_v31  ;;  %v5416_v31 = vand.u32 4294901760, %v338_v29 }
 0x2fa   : > { %2825 = vmatpush.xpose.msrb.mxu3 %v5344_v44 }
 0x2fb   : > { %2781 = vmatpush.xpose.msrb.mxu2 %v5361_v41  ;;  %v5439_v18 = vsub.f32 %v338_v29, %v5416_v31  ;;  %v2732_v29 = vsub.f32 %v5420_v12, %v5883_v42 }
 0x2fd   : > { %2631 = vmatpush.xpose.msrb.mxu0 %v5357_v43  ;;  %2704 = vmatpush.xpose.msrb.mxu1 %v2703_v21  ;;  %v336_v21 = vld [vmem:[%s3571_s21 + $0x300] sm:$0xff]  ;;  %v2733_v42 = vand.u32 4294901760, %v2732_v29 }
 0x2fe   : > { %2827 = vmatpush.xpose.msrb.mxu3 %v5357_v43  ;;  %v5435_v58 = vand.u32 4294901760, %v336_v21 }
 0x2ff   : > { %2784 = vmatpush.xpose.msrb.mxu2 %v5374_v34 }
 0x300   : > { %v5457_v57 = vsub.f32 %v336_v21, %v5435_v58  ;;  %v550_v21 = vsel %vm368_vm2, %v359_v63, 0 }
 0x301   : > { %2633 = vmatpush.xpose.msrb.mxu0 %v5366_v5  ;;  %2710 = vmatpush.xpose.msrb.mxu1 %v2709_v3  ;;  %v2721_v3 = vand.u32 4294901760, %v2720_v9  ;;  %v5444_v9 = vsub.f32 %v559_v10, %v5424_v60  ;;  %v5888_v10 = vand.u32 4294901760, %v5439_v18  ;;  %v5487_v29 = vand.u32 4294901760, %v550_v21 }
 0x302   : > { %2829 = vmatpush.xpose.msrb.mxu3 %v5366_v5  ;;  %v5893_v45 = vand.u32 4294901760, %v5457_v57 }
 0x303   : > { %2787 = vmatpush.xpose.msrb.mxu2 %v5380_v39  ;;  %v5891_v46 = vand.u32 4294901760, %v5444_v9  ;;  %v2738_v36 = vsub.f32 %v5439_v18, %v5888_v10  ;;  %v547_v10 = vsel %vm368_vm2, %v357_v20, 0  ;;  %v3007_v20 = vsub.f32 %v5463_v33, %v5892_v49 }
 0x305   : > { %2635 = vmatpush.xpose.msrb.mxu0 %v5386_v23  ;;  %2716 = vmatpush.xpose.msrb.mxu1 %v2715_v37  ;;  %v5886_v37 = vand.u32 4294901760, %v5428_v14  ;;  %v2739_v32 = vand.u32 4294901760, %v2738_v36  ;;  %v5506_v36 = vand.u32 4294901760, %v547_v10  ;;  %v3008_v49 = vand.u32 4294901760, %v3007_v20 }
 0x306   : > { %2831 = vmatpush.xpose.msrb.mxu3 %v5386_v23 }
 0x307   : > { %2790 = vmatpush.xpose.msrb.mxu2 %v5403_v54 }
 0x309   : > { %2637 = vmatpush.xpose.msrb.mxu0 %v5400_v19  ;;  %2722 = vmatpush.xpose.msrb.mxu1 %v2721_v3  ;;  %v2995_v3 = vsub.f32 %v5428_v14, %v5886_v37  ;;  %v3001_v37 = vsub.f32 %v5444_v9, %v5891_v46  ;;  %v2744_v46 = vsub.f32 %v5457_v57, %v5893_v45 }
 0x30a   : > { %2833 = vmatpush.xpose.msrb.mxu3 %v5400_v19 }
 0x30b   : > { %2793 = vmatpush.xpose.msrb.mxu2 %v5420_v12  ;;  %v2996_v63 = vand.u32 4294901760, %v2995_v3  ;;  %v5504_v3 = vsub.f32 %v550_v21, %v5487_v29  ;;  %v5515_v21 = vand.u32 4294901760, %v544_v28 }
 0x30d   : > { %2639 = vmatpush.xpose.msrb.mxu0 %v5416_v31  ;;  %2728 = vmatpush.xpose.msrb.mxu1 %v2727_v35  ;;  %v5485_v35 = vsub.f32 %v553_v51, %v5469_v38  ;;  %v3002_v51 = vand.u32 4294901760, %v3001_v37  ;;  %v2745_v37 = vand.u32 4294901760, %v2744_v46  ;;  %v3018_v45 = vand.u32 4294901760, %v5504_v3 }
 0x30e   : > { %2835 = vmatpush.xpose.msrb.mxu3 %v5416_v31 }
 0x30f   : > { %2796 = vmatpush.xpose.msrb.mxu2 %v5439_v18 }
 0x311   : > { %2641 = vmatpush.xpose.msrb.mxu0 %v5435_v58  ;;  %2734 = vmatpush.xpose.msrb.mxu1 %v2733_v42  ;;  %v3012_v42 = vand.u32 4294901760, %v5485_v35 }
 0x312   : > { %2837 = vmatpush.xpose.msrb.mxu3 %v5435_v58 }
 0x313   : > { %2799 = vmatpush.xpose.msrb.mxu2 %v5457_v57  ;;  %v3013_v13 = vsub.f32 %v5485_v35, %v3012_v42 }
 0x314   : > { %2647 = vmatmul.f32.vlgmr.msrb.gmra.mxu0 %v5947_v59  ;;  %v5523_v59 = vsub.f32 %v547_v10, %v5506_v36 }
 0x315   : > { %2848 = vmatpush.xpose.msra.mxu0 %v2653_v48  ;;  %v353_v48 = vld [vmem:[%s3571_s21 + $0x388] sm:$0xff]  ;;  %2740 = vmatpush.xpose.msrb.mxu1 %v2739_v32  ;;  %v5976_v32 = vand.u32 4294901760, %v5262_v1  ;;  %v3014_v10 = vand.u32 4294901760, %v3013_v13 }
 0x316   : > { %2997 = vmatpush.xpose.msra.mxu3 %v2996_v63  ;;  %v5975_v63 = vand.u32 4294901760, %v5242_v17  ;;  %2802 = vmatmul.f32.vlgmr.msrb.gmra.mxu2 %v5949_v52  ;;  %v351_v17 = vld [vmem:[%s3571_s21 + $0x378] sm:$0xff]  ;;  %v5532_v52 = vsub.f32 %v544_v28, %v5515_v21  ;;  %v3024_v20 = vand.u32 4294901760, %v5523_v59  ;;  %v5977_v28 = vand.u32 4294901760, %v5281_v47 }
 0x317   : > { %2952 = vmatpush.xpose.msra.mxu2 %v5408_v11  ;;  %2841 = vmatmul.f32.vlgmr.msrb.gmra.mxu3 %v5948_v26  ;;  %v541_v26 = vsel %vm368_vm2, %v353_v48, 0  ;;  %v538_v1 = vsel %vm368_vm2, %v351_v17, 0  ;;  %v347_v17 = vld [vmem:[%s3571_s21 + $0x358] sm:$0xff] }
 0x318   : > { %v5534_v46 = vand.u32 4294901760, %v541_v26  ;;  %v5554_v13 = vand.u32 4294901760, %v538_v1 }
 0x319   : > { %2852 = vmatpush.xpose.msra.mxu0 %v5975_v63  ;;  %2746 = vmatpush.xpose.msrb.mxu1 %v2745_v37  ;;  %v3025_v63 = vsub.f32 %v5523_v59, %v3024_v20 }
 0x31a   : > { %3003 = vmatpush.xpose.msra.mxu3 %v3002_v51  ;;  %v3019_v51 = vsub.f32 %v5504_v3, %v3018_v45  ;;  %v5549_v48 = vsub.f32 %v541_v26, %v5534_v46 }
 0x31b   : > { %2954 = vmatpush.xpose.msra.mxu2 %v5424_v60 }
 0x31c   : > { %2748 = vmatmul.f32.vlgmr.msrb.gmra.mxu1 %v3914_v24  ;;  %v3020_v37 = vand.u32 4294901760, %v3019_v51  ;;  %v5567_v51 = vsub.f32 %v538_v1, %v5554_v13 }
 0x31d   : > { %2856 = vmatpush.xpose.msra.mxu0 %v5976_v32  ;;  %2915 = vmatpush.xpose.msra.mxu1 %v5223_v53  ;;  %v349_v53 = vld [vmem:[%s3571_s21 + $0x368] sm:$0xff]  ;;  %v5896_v32 = vand.u32 4294901760, %v5549_v48 }
 0x31e   : > { %3009 = vmatpush.xpose.msra.mxu3 %v3008_v49  ;;  %v5894_v49 = vand.u32 4294901760, %v5532_v52  ;;  %v535_v47 = vsel %vm368_vm2, %v349_v53, 0  ;;  %v345_v53 = vld [vmem:[%s3571_s21 + $0x348] sm:$0xff]  ;;  %v5895_v1 = vand.u32 4294901760, %v5567_v51 }
 0x31f   : > { %2956 = vmatpush.xpose.msra.mxu2 %v5446_v16 }
 0x320   : > { %v3031_v26 = vsub.f32 %v5532_v52, %v5894_v49 }
 0x321   : > { %2860 = vmatpush.xpose.msra.mxu0 %v5977_v28  ;;  %2917 = vmatpush.xpose.msra.mxu1 %v5230_v4  ;;  %v5978_v4 = vand.u32 4294901760, %v5295_v55  ;;  %v5569_v28 = vand.u32 4294901760, %v535_v47  ;;  %v532_v55 = vsel %vm368_vm2, %v347_v17, 0  ;;  %v529_v17 = vsel %vm368_vm2, %v345_v53, 0 }
 0x322   : > { %3015 = vmatpush.xpose.msra.mxu3 %v3014_v10  ;;  %v3026_v10 = vand.u32 4294901760, %v3025_v63  ;;  %v5584_v49 = vand.u32 4294901760, %v532_v55 }
 0x323   : > { %2958 = vmatpush.xpose.msra.mxu2 %v5469_v38  ;;  %v5582_v63 = vsub.f32 %v535_v47, %v5569_v28  ;;  %v3043_v47 = vsub.f32 %v5567_v51, %v5895_v1 }
 0x324   : > { %v5599_v53 = vsub.f32 %v532_v55, %v5584_v49 }
 0x325   : > { %2864 = vmatpush.xpose.msra.mxu0 %v5978_v4  ;;  %2919 = vmatpush.xpose.msra.mxu1 %v5245_v30  ;;  %v5979_v30 = vand.u32 4294901760, %v5309_v8  ;;  %v3032_v4 = vand.u32 4294901760, %v3031_v26  ;;  %v343_v8 = vld [vmem:[%s3571_s21 + $0x338] sm:$0xff]  ;;  %v5592_v26 = vand.u32 4294901760, %v529_v17 }
 0x326   : > { %3021 = vmatpush.xpose.msra.mxu3 %v3020_v37  ;;  %v3037_v37 = vsub.f32 %v5549_v48, %v5896_v32  ;;  %v5898_v1 = vand.u32 4294901760, %v5599_v53 }
 0x327   : > { %2960 = vmatpush.xpose.msra.mxu2 %v5487_v29 }
 0x329   : > { %2868 = vmatpush.xpose.msra.mxu0 %v5979_v30  ;;  %2921 = vmatpush.xpose.msra.mxu1 %v5259_v22  ;;  %v5980_v22 = vand.u32 4294901760, %v5315_v7  ;;  %v5897_v30 = vand.u32 4294901760, %v5582_v63  ;;  %v526_v7 = vsel %vm368_vm2, %v343_v8, 0  ;;  %v339_v8 = vld [vmem:[%s3571_s21 + $0x318] sm:$0xff] }
 0x32a   : > { %3027 = vmatpush.xpose.msra.mxu3 %v3026_v10  ;;  %v3038_v10 = vand.u32 4294901760, %v3037_v37  ;;  %v3044_v37 = vand.u32 4294901760, %v3043_v47  ;;  %v5614_v32 = vand.u32 4294901760, %v526_v7  ;;  %v3055_v47 = vsub.f32 %v5599_v53, %v5898_v1 }
 0x32b   : > { %2962 = vmatpush.xpose.msra.mxu2 %v5506_v36  ;;  %v3049_v55 = vsub.f32 %v5582_v63, %v5897_v30 }
 0x32d   : > { %2872 = vmatpush.xpose.msra.mxu0 %v5980_v22  ;;  %2923 = vmatpush.xpose.msra.mxu1 %v5277_v0  ;;  %v341_v22 = vld [vmem:[%s3571_s21 + $0x328] sm:$0xff]  ;;  %v5981_v0 = vand.u32 4294901760, %v5335_v56 }
 0x32e   : > { %3033 = vmatpush.xpose.msra.mxu3 %v3032_v4  ;;  %v5608_v4 = vsub.f32 %v529_v17, %v5592_v26  ;;  %v523_v56 = vsel %vm368_vm2, %v341_v22, 0  ;;  %v337_v22 = vld [vmem:[%s3571_s21 + $0x308] sm:$0xff] }
 0x32f   : > { %2964 = vmatpush.xpose.msra.mxu2 %v5515_v21  ;;  %v5629_v30 = vand.u32 4294901760, %v523_v56 }
 0x330   : > { %v3060_v17 = vand.u32 4294901760, %v5608_v4 }
 0x331   : > { %2876 = vmatpush.xpose.msra.mxu0 %v5981_v0  ;;  %2925 = vmatpush.xpose.msra.mxu1 %v5291_v62  ;;  %v5982_v62 = vand.u32 4294901760, %v5348_v27  ;;  %v5627_v0 = vsub.f32 %v526_v7, %v5614_v32  ;;  %v520_v27 = vsel %vm368_vm2, %v339_v8, 0  ;;  %v5984_v8 = vand.u32 4294901760, %v5374_v34 }
 0x332   : > { %3039 = vmatpush.xpose.msra.mxu3 %v3038_v10  ;;  %v3050_v10 = vand.u32 4294901760, %v3049_v55  ;;  %v3056_v55 = vand.u32 4294901760, %v3055_v47  ;;  %v5644_v1 = vand.u32 4294901760, %v520_v27  ;;  %v5985_v34 = vand.u32 4294901760, %v5380_v39 }
 0x333   : > { %2966 = vmatpush.xpose.msra.mxu2 %v5534_v46  ;;  %v3066_v7 = vand.u32 4294901760, %v5627_v0 }
 0x334   : > { %v5656_v47 = vsub.f32 %v520_v27, %v5644_v1 }
 0x335   : > { %2880 = vmatpush.xpose.msra.mxu0 %v5982_v62  ;;  %2927 = vmatpush.xpose.msra.mxu1 %v5301_v6  ;;  %v5983_v6 = vand.u32 4294901760, %v5361_v41  ;;  %v5642_v62 = vsub.f32 %v523_v56, %v5629_v30  ;;  %v517_v41 = vsel %vm368_vm2, %v337_v22, 0 }
 0x336   : > { %3045 = vmatpush.xpose.msra.mxu3 %v3044_v37  ;;  %v3061_v37 = vsub.f32 %v5608_v4, %v3060_v17 }
 0x337   : > { %2968 = vmatpush.xpose.msra.mxu2 %v5554_v13  ;;  %v3072_v56 = vand.u32 4294901760, %v5642_v62 }
 0x339   : > { %2884 = vmatpush.xpose.msra.mxu0 %v5983_v6  ;;  %2929 = vmatpush.xpose.msra.mxu1 %v5321_v61  ;;  %v3062_v61 = vand.u32 4294901760, %v3061_v37  ;;  %v5658_v6 = vand.u32 4294901760, %v517_v41  ;;  %v3073_v22 = vsub.f32 %v5642_v62, %v3072_v56  ;;  %v3078_v37 = vand.u32 4294901760, %v5656_v47 }
 0x33a   : > { %3051 = vmatpush.xpose.msra.mxu3 %v3050_v10  ;;  %v3067_v10 = vsub.f32 %v5627_v0, %v3066_v7 }
 0x33b   : > { %2970 = vmatpush.xpose.msra.mxu2 %v5569_v28  ;;  %v5669_v27 = vsub.f32 %v517_v41, %v5658_v6  ;;  %v3079_v39 = vsub.f32 %v5656_v47, %v3078_v37  ;;  %v5987_v41 = vand.u32 4294901760, %v5420_v12  ;;  %v5989_v12 = vand.u32 4294901760, %v5457_v57 }
 0x33c   : > { %v5991_v57 = vand.u32 4294901760, %v5444_v9 }
 0x33d   : > { %2888 = vmatpush.xpose.msra.mxu0 %v5984_v8  ;;  %2931 = vmatpush.xpose.msra.mxu1 %v5332_v25  ;;  %v3068_v25 = vand.u32 4294901760, %v3067_v10  ;;  %v3084_v8 = vand.u32 4294901760, %v5669_v27 }
 0x33e   : > { %3057 = vmatpush.xpose.msra.mxu3 %v3056_v55  ;;  %v5986_v55 = vand.u32 4294901760, %v5403_v54  ;;  %v3080_v54 = vand.u32 4294901760, %v3079_v39 }
 0x33f   : > { %2972 = vmatpush.xpose.msra.mxu2 %v5584_v49 }
 0x341   : > { %2892 = vmatpush.xpose.msra.mxu0 %v5985_v34  ;;  %2933 = vmatpush.xpose.msra.mxu1 %v5344_v44  ;;  %v3074_v44 = vand.u32 4294901760, %v3073_v22 }
 0x342   : > { %3063 = vmatpush.xpose.msra.mxu3 %v3062_v61  ;;  %v5988_v61 = vand.u32 4294901760, %v5439_v18  ;;  %v5996_v18 = vand.u32 4294901760, %v5582_v63 }
 0x343   : > { %2974 = vmatpush.xpose.msra.mxu2 %v5592_v26 }
 0x345   : > { %2896 = vmatpush.xpose.msra.mxu0 %v5986_v55  ;;  %2935 = vmatpush.xpose.msra.mxu1 %v5357_v43  ;;  %v3085_v43 = vsub.f32 %v5669_v27, %v3084_v8 }
 0x346   : > { %3069 = vmatpush.xpose.msra.mxu3 %v3068_v25 }
 0x347   : > { %2976 = vmatpush.xpose.msra.mxu2 %v5614_v32  ;;  %v3086_v10 = vand.u32 4294901760, %v3085_v43 }
 0x349   : > { %2900 = vmatpush.xpose.msra.mxu0 %v5987_v41  ;;  %2937 = vmatpush.xpose.msra.mxu1 %v5366_v5  ;;  %v5990_v5 = vand.u32 4294901760, %v5428_v14 }
 0x34a   : > { %3075 = vmatpush.xpose.msra.mxu3 %v3074_v44 }
 0x34b   : > { %2978 = vmatpush.xpose.msra.mxu2 %v5629_v30 }
 0x34d   : > { %2904 = vmatpush.xpose.msra.mxu0 %v5988_v61  ;;  %2939 = vmatpush.xpose.msra.mxu1 %v5386_v23  ;;  %v5992_v23 = vand.u32 4294901760, %v5463_v33 }
 0x34e   : > { %3081 = vmatpush.xpose.msra.mxu3 %v3080_v54 }
 0x34f   : > { %2980 = vmatpush.xpose.msra.mxu2 %v5644_v1 }
 0x351   : > { %2908 = vmatpush.xpose.msra.mxu0 %v5989_v12  ;;  %2941 = vmatpush.xpose.msra.mxu1 %v5400_v19  ;;  %v5997_v19 = vand.u32 4294901760, %v5599_v53 }
 0x352   : > { %3087 = vmatpush.xpose.msra.mxu3 %v3086_v10 }
 0x353   : > { %2982 = vmatpush.xpose.msra.mxu2 %v5658_v6 }
 0x354   : > { %2910 = vmatmul.f32.vlgmr.msra.gmra.mxu0 %v3914_v24 }
 0x355   : > { %3095 = vmatpush.xpose.msrb.mxu0 %v5428_v14  ;;  %2943 = vmatpush.xpose.msra.mxu1 %v5416_v31  ;;  %v1284_v31 = vpop.f32.mrf.mxu0  ;;  %v1478_v14 = vpop.f32.mrf.mxu3 }
 0x356   : > { %3256 = vmatpush.xpose.msrb.mxu3 %v5408_v11  ;;  %2988 = vmatmul.f32.vlgmr.msra.gmra.mxu2 %v4065_v40  ;;  %v5994_v40 = vand.u32 4294901760, %v5549_v48 }
 0x357   : > { %3189 = vmatpush.xpose.msrb.mxu2 %v5990_v5  ;;  %3089 = vmatmul.f32.vlgmr.msra.gmra.mxu3 %v4031_v15 }
 0x359   : > { %3098 = vmatpush.xpose.msrb.mxu0 %v5444_v9  ;;  %2945 = vmatpush.xpose.msra.mxu1 %v5435_v58 }
 0x35a   : > { %3258 = vmatpush.xpose.msrb.mxu3 %v5424_v60 }
 0x35b   : > { %3193 = vmatpush.xpose.msrb.mxu2 %v5991_v57 }
 0x35c   : > { %2947 = vmatmul.f32.vlgmr.msra.gmra.mxu1 %v3914_v24  ;;  %v5993_v24 = vand.u32 4294901760, %v5532_v52 }
 0x35d   : > { %3101 = vmatpush.xpose.msrb.mxu0 %v5463_v33  ;;  %3148 = vmatpush.xpose.msrb.mxu1 %v5408_v11  ;;  %v1385_v11 = vpop.f32.mrf.mxu1  ;;  %v1547_v9 = vpop.f32.mrf.mxu0 }
 0x35e   : > { %3260 = vmatpush.xpose.msrb.mxu3 %v5446_v16  ;;  %v1726_v33 = vpop.f32.mrf.mxu3 }
 0x35f   : > { %3197 = vmatpush.xpose.msrb.mxu2 %v5992_v23 }
 0x361   : > { %3104 = vmatpush.xpose.msrb.mxu0 %v5485_v35  ;;  %3150 = vmatpush.xpose.msrb.mxu1 %v5424_v60  ;;  %v1439_v60 = vpop.f32.mrf.mxu2 }
 0x362   : > { %3262 = vmatpush.xpose.msrb.mxu3 %v5469_v38 }
 0x363   : > { %3201 = vmatpush.xpose.msrb.mxu2 %v3012_v42 }
 0x365   : > { %3107 = vmatpush.xpose.msrb.mxu0 %v5504_v3  ;;  %3152 = vmatpush.xpose.msrb.mxu1 %v5446_v16  ;;  %v1584_v58 = vpop.f32.mrf.mxu1 }
 0x366   : > { %3264 = vmatpush.xpose.msrb.mxu3 %v5487_v29 }
 0x367   : > { %3205 = vmatpush.xpose.msrb.mxu2 %v3018_v45  ;;  %v5995_v45 = vand.u32 4294901760, %v5567_v51 }
 0x369   : > { %3110 = vmatpush.xpose.msrb.mxu0 %v5523_v59  ;;  %3154 = vmatpush.xpose.msrb.mxu1 %v5469_v38  ;;  %v1625_v16 = vpop.f32.mrf.mxu2 }
 0x36a   : > { %3266 = vmatpush.xpose.msrb.mxu3 %v5506_v36 }
 0x36b   : > { %3209 = vmatpush.xpose.msrb.mxu2 %v3024_v20 }
 0x36d   : > { %3113 = vmatpush.xpose.msrb.mxu0 %v5532_v52  ;;  %3156 = vmatpush.xpose.msrb.mxu1 %v5487_v29  ;;  %v1819_v38 = vpop.f32.mrf.mxu1  ;;  %v1925_v29 = vpop.f32.mrf.mxu3  ;;  %v1386_v52 = vadd.f32 %v1385_v11, %v1284_v31 }
 0x36e   : > { %3268 = vmatpush.xpose.msrb.mxu3 %v5515_v21  ;;  %v3301_v31 = vpop.permute.xlu0 %3300 }
 0x36f   : > { %3213 = vmatpush.xpose.msrb.mxu2 %v5993_v24  ;;  %v1440_v20 = vadd.f32 %v1439_v60, %v1386_v52 }
 0x371   : > { %3116 = vmatpush.xpose.msrb.mxu0 %v5549_v48  ;;  %3158 = vmatpush.xpose.msrb.mxu1 %v5506_v36  ;;  %v1888_v35 = vpop.f32.mrf.mxu2 }
 0x372   : > { %3270 = vmatpush.xpose.msrb.mxu3 %v5534_v46 }
 0x373   : > { %3217 = vmatpush.xpose.msrb.mxu2 %v5994_v40 }
 0x375   : > { %3119 = vmatpush.xpose.msrb.mxu0 %v5567_v51  ;;  %3160 = vmatpush.xpose.msrb.mxu1 %v5515_v21  ;;  %v2067_v42 = vpop.f32.mrf.mxu1  ;;  %v1479_v51 = vadd.f32 %v1478_v14, %v1440_v20 }
 0x376   : > { %3272 = vmatpush.xpose.msrb.mxu3 %v5554_v13 }
 0x377   : > { %3221 = vmatpush.xpose.msrb.mxu2 %v5995_v45 }
 0x379   : > { %3122 = vmatpush.xpose.msrb.mxu0 %v5582_v63  ;;  %3162 = vmatpush.xpose.msrb.mxu1 %v5534_v46  ;;  %v2121_v36 = vpop.f32.mrf.mxu2  ;;  %v1548_v63 = vadd.f32 %v1547_v9, %v1479_v51 }
 0x37a   : > { %3274 = vmatpush.xpose.msrb.mxu3 %v5569_v28 }
 0x37b   : > { %3225 = vmatpush.xpose.msrb.mxu2 %v5996_v18 }
 0x37d   : > { %3125 = vmatpush.xpose.msrb.mxu0 %v5599_v53  ;;  %3164 = vmatpush.xpose.msrb.mxu1 %v5554_v13  ;;  %v2266_v21 = vpop.f32.mrf.mxu1 }
 0x37e   : > { %3276 = vmatpush.xpose.msrb.mxu3 %v5584_v49 }
 0x37f   : > { %3229 = vmatpush.xpose.msrb.mxu2 %v5997_v19  ;;  %v5998_v19 = vld [vmem:[#allocation11_spill] sm:$0xff] }
 0x380   : > { %v3292_v11 = vmax.f32 %v5998_v19, 0.0 }
 0x381   : > { %3128 = vmatpush.xpose.msrb.mxu0 %v5608_v4  ;;  %3166 = vmatpush.xpose.msrb.mxu1 %v5569_v28 }
 0x382   : > { %3278 = vmatpush.xpose.msrb.mxu3 %v5592_v26 }
 0x383   : > { %3233 = vmatpush.xpose.msrb.mxu2 %v3060_v17  ;;  %v1585_v17 = vadd.f32 %v1584_v58, %v1548_v63 }
 0x385   : > { %3131 = vmatpush.xpose.msrb.mxu0 %v5627_v0  ;;  %3168 = vmatpush.xpose.msrb.mxu1 %v5584_v49  ;;  %v2501_v48 = vpop.f32.mrf.mxu1 }
 0x386   : > { %3280 = vmatpush.xpose.msrb.mxu3 %v5614_v32 }
 0x387   : > { %3237 = vmatpush.xpose.msrb.mxu2 %v3066_v7 }
 0x389   : > { %3134 = vmatpush.xpose.msrb.mxu0 %v5642_v62  ;;  %3170 = vmatpush.xpose.msrb.mxu1 %v5592_v26 }
 0x38a   : > { %3282 = vmatpush.xpose.msrb.mxu3 %v5629_v30 }
 0x38b   : > { %3241 = vmatpush.xpose.msrb.mxu2 %v3072_v56  ;;  %v1626_v56 = vadd.f32 %v1625_v16, %v1585_v17 }
 0x38d   : > { %3137 = vmatpush.xpose.msrb.mxu0 %v5656_v47  ;;  %3172 = vmatpush.xpose.msrb.mxu1 %v5614_v32  ;;  %v1727_v25 = vadd.f32 %v1726_v33, %v1626_v56 }
 0x38e   : > { %3284 = vmatpush.xpose.msrb.mxu3 %v5644_v1 }
 0x38f   : > { %3245 = vmatpush.xpose.msrb.mxu2 %v3078_v37 }
 0x391   : > { %3140 = vmatpush.xpose.msrb.mxu0 %v5669_v27  ;;  %3174 = vmatpush.xpose.msrb.mxu1 %v5629_v30 }
 0x392   : > { %3286 = vmatpush.xpose.msrb.mxu3 %v5658_v6 }
 0x393   : > { %3249 = vmatpush.xpose.msrb.mxu2 %v3084_v8 }
 0x394   : > { %3143 = vmatmul.f32.vlgmr.msrb.gmra.mxu0 %v4042_v2  ;;  %v1780_v2 = vpop.f32.mrf.mxu0 }
 0x395   : > { %3176 = vmatpush.xpose.msrb.mxu1 %v5644_v1  ;;  %3288 = vmatmul.f32.vlgmr.msrb.gmra.mxu3 %v4031_v15  ;;  %v1781_v27 = vadd.f32 %v1780_v2, %v1727_v25  ;;  %v3303_v2 = vsub.f32 %v3301_v31, %v3292_v11 }
 0x396   : > { %3251 = vmatmul.f32.vlgmr.msrb.gmra.mxu2 %v4031_v15  ;;  %v2160_v15 = vpop.f32.mrf.mxu3 }
 0x397   : > { %v1820_v44 = vadd.f32 %v1819_v38, %v1781_v27 }
 0x399   : > { %3178 = vmatpush.xpose.msrb.mxu1 %v5658_v6  ;;  %v2749_v30 = vpop.f32.mrf.mxu1  ;;  %v1889_v43 = vadd.f32 %v1888_v35, %v1820_v44 }
 0x39b   : > { %v1926_v5 = vadd.f32 %v1925_v29, %v1889_v43 }
 0x39c   : > { %3182 = vmatmul.f32.vlgmr.msrb.gmra.mxu1 %v5946_v50  ;;  %v1966_v3 = vpop.f32.mrf.mxu0  ;;  %v2307_v50 = vpop.f32.mrf.mxu2 }
 0x39d   : > { %v2068_v46 = vadd.f32 %v2067_v42, %v1966_v3  ;;  %v3293_v45 = vmax.f32 %v1926_v5, 0.0 }
 0x39e   : > { %v2408_v49 = vpop.f32.mrf.mxu3 }
 0x39f   : > { %v2122_v13 = vadd.f32 %v2121_v36, %v2068_v46  ;;  %v3304_v16 = vsub.f32 %v3301_v31, %v3293_v45  ;;  %v3307_v36 = vmax.f32 %v3303_v2, 0.0 }
 0x3a1   : > { %v2161_v1 = vadd.f32 %v2160_v15, %v2122_v13  ;;  %v3308_v29 = vmax.f32 %v3304_v16, 0.0 }
 0x3a3   : > { %v3312_v52 = vadd.f32 %v3308_v29, %v3307_v36 }
 0x3a4   : > { %v2229_v59 = vpop.f32.mrf.mxu0  ;;  %v2570_v28 = vpop.f32.mrf.mxu2 }
 0x3a5   : > { %v2230_v53 = vadd.f32 %v2229_v59, %v2161_v1 }
 0x3a6   : > { %v2607_v26 = vpop.f32.mrf.mxu3 }
 0x3a7   : > { %v2267_v62 = vadd.f32 %v2266_v21, %v2230_v53 }
 0x3a9   : > { %v2308_v34 = vadd.f32 %v2307_v50, %v2267_v62 }
 0x3ab   : > { %v2409_v55 = vadd.f32 %v2408_v49, %v2308_v34  ;;  %v3311_v49 = vld [vmem:[#allocation3] sm:$0xff] }
 0x3ac   : > { %v2462_v32 = vpop.f32.mrf.mxu0  ;;  %v2803_v7 = vpop.f32.mrf.mxu2 }
 0x3ad   : > { %v2463_v39 = vadd.f32 %v2462_v32, %v2409_v55 }
 0x3ae   : > { %v2842_v6 = vpop.f32.mrf.mxu3 }
 0x3af   : > { %v2502_v54 = vadd.f32 %v2501_v48, %v2463_v39 }
 0x3b1   : > { %v2571_v12 = vadd.f32 %v2570_v28, %v2502_v54 }
 0x3b3   : > { %v2608_v24 = vadd.f32 %v2607_v26, %v2571_v12 }
 0x3b4   : > { %v2648_v4 = vpop.f32.mrf.mxu0 }
 0x3b5   : > { %v2750_v0 = vadd.f32 %v2749_v30, %v2648_v4  ;;  %v3294_v60 = vmax.f32 %v2608_v24, 0.0 }
 0x3b7   : > { %v2804_v47 = vadd.f32 %v2803_v7, %v2750_v0  ;;  %v3305_v35 = vsub.f32 %v3301_v31, %v3294_v60 }
 0x3b9   : > { %v2843_v22 = vadd.f32 %v2842_v6, %v2804_v47  ;;  %v3309_v15 = vmax.f32 %v3305_v35, 0.0 }
 0x3bb   : > { %v3313_v46 = vadd.f32 %v3312_v52, %v3309_v15 }
 0x3d1   : > { %v2911_v37 = vpop.f32.mrf.mxu0 }
 0x3d2   : > { %v2912_v8 = vadd.f32 %v2911_v37, %v2843_v22 }
 0x3d9   : > { %v2948_v41 = vpop.f32.mrf.mxu1  ;;  %v2989_v10 = vpop.f32.mrf.mxu2 }
 0x3da   : > { %v2949_v61 = vadd.f32 %v2948_v41, %v2912_v8  ;;  %v3090_v23 = vpop.f32.mrf.mxu3 }
 0x3dc   : > { %v2990_v57 = vadd.f32 %v2989_v10, %v2949_v61 }
 0x3de   : > { %v3091_v18 = vadd.f32 %v3090_v23, %v2990_v57 }
 0x411   : > { %v3144_v40 = vpop.f32.mrf.mxu0 }
 0x412   : > { %v3145_v14 = vadd.f32 %v3144_v40, %v3091_v18 }
 0x418   : > { %v3289_v38 = vpop.f32.mrf.mxu3 }
 0x419   : > { %v3183_v58 = vpop.f32.mrf.mxu1  ;;  %v3252_v9 = vpop.f32.mrf.mxu2 }
 0x41a   : > { %v3184_v33 = vadd.f32 %v3183_v58, %v3145_v14 }
 0x41c   : > { %v3253_v42 = vadd.f32 %v3252_v9, %v3184_v33 }
 0x41e   : > { %v3290_v3 = vadd.f32 %v3289_v38, %v3253_v42 }
 0x420   : > { %v3295_v21 = vmax.f32 %v3290_v3, 0.0 }
 0x422   : > { %v3306_v59 = vsub.f32 %v3301_v31, %v3295_v21 }
 0x424   : > { %v3310_v50 = vmax.f32 %v3306_v59, 0.0 }
 0x426   : > { %v3314_v20 = vadd.f32 %v3313_v46, %v3310_v50 }
 0x428   : > { %3315 = vadd.xlane.f32.xlu0 %v3314_v20 }
 0x49a   : > { %3322 = sbr.rel (%p3427_p6) target bundleno = 1193 (0x4a9), region = 40 }
 0x49b   : > { %v3316_v48 = vpop.xlane.xlu0 %3315 }
 0x49c   : > { %v3317_v13 = vadd.f32 %v3316_v48, %v3311_v49 }
 0x49e   : > { %3318 = vst [vmem:[#allocation3] sm:$0xff] %v3317_v13 }
 0x4a5   : > { %v3323_v32 = vld [vmem:[#allocation3] sm:$0xff] }
 0x4a6   : > { %v3324_v51 = vmul.f32 0.0009765625, %v3323_v32 }
 0x4a8   : > { %3325 = vst [vmem:[#allocation4] sm:$0xff] %v3324_v51 }
 0x4a9 PF: > { %p3437_p7 = scmp.eq.s32.totalorder %s3417_s15, 1  ;;  %s3336_s9 = sshll.u32 %s5804_s3, 4  ;;  %s3337_s9 = int_to_ptr.hbm [resolvable:$true] %s3336_s9 }
 0x4aa   : > { %s3525_s10 = smov [#allocation4]  }
 0x4ab   : > { %s3334_s11 = sshll.u32 %s3525_s10, 4  ;;  %s3335_s11 = int_to_ptr.vmem [resolvable:$true] %s3334_s11 }
 0x4ac   : > { %3434 = dma.vmem_to_hbm [thread:$0]  (%p3437_p7), %s3335_s11, 128, %s3337_s9, [#allocation5]  }
 0x4ad   : > { %3508 = dma.done.wait (%p3437_p7), [#allocation5], 128  }
 0x4ae   : > { %3510 = vsyncadd (%p3437_p7), [#allocation5], 4294967168 }
 0x4af PF: > { %s14_s14 = sadd.s32 1, %s3521_s14   ;;  %s5999_s12 = smov %s3517_s13 }
 0x4b0   : > { %p11_p8 = scmp.ge.s32.totalorder %s14_s14, 4   ;;  %s6000_s13 = smov %s6002_s16 }
 0x4b2   :  { %13 = sbr.rel (!%p11_p8) target bundleno = 2 (0x2), region = 74 }
 0x4b7   :  { %3350 = vsyncpa [#allocation5], 1 }
 0x4b8   :  { %3352 = vsyncpa [#allocation5 + $0x1], 1 }

</bundles_post_ra>
